<compile_context>
chip_gen: v5e
topology: v5e:2x2
jax: 0.10.0
libtpu: 0.0.40
codegen_flags: <defaults>
</compile_context>

<pallas_src>
import functools

import jax
import jax.numpy as jnp
from jax.experimental import pallas as pl
from jax.experimental.pallas import tpu as pltpu


LANE = 128          # lane width of a vreg
CHUNK = 128         # in-kernel lane chunk: keeps the encoder accumulator in vregs


def _forecaster_kernel(
    x_ref,      # (T*D, tb)  bf16  history, feature-major, batch on lanes
    lag_ref,    # (L, tb)    bf16  lag features, batch on lanes
    w1t_ref,    # (H, D)     bf16  encoder layer 1 (transposed)
    b1_ref,     # (H, 1)     f32
    w2t_ref,    # (Dout, H)  bf16  encoder layer 2 (transposed)
    wp1mt_ref,  # (F, Dout)  bf16  predictor layer 1, mvse slice (transposed)
    wp1lt_ref,  # (F, L)     bf16  predictor layer 1, lag slice (transposed)
    bp1_ref,    # (F, 1)     f32   bp1 + b2 @ wp1_mvse already folded in
    wp2t_ref,   # (F2, F)    bf16  predictor layer 2 (transposed)
    bp2_ref,    # (F2, 1)    f32
    wp3_ref,    # (F2, 1)    f32   final layer column (VPU path)
    bp3_ref,    # (1, 1)     f32
    out_ref,    # (1, tb)    f32   lane-dense output row
    *,
    seq_len,
    feat_dim,
    chunk,
):
    f32, bf16 = jnp.float32, jnp.bfloat16
    tb = out_ref.shape[1]
    hidden = w1t_ref.shape[0]
    inv_t = 1.0 / seq_len

    # Weights are tiny (~20 KB); load once per grid step, hoisted out of loops.
    w1t = w1t_ref[...]
    b1 = b1_ref[...]
    w2t = w2t_ref[...]
    wp1mt = wp1mt_ref[...]
    wp1lt = wp1lt_ref[...]
    bp1 = bp1_ref[...]
    wp2t = wp2t_ref[...]
    bp2 = bp2_ref[...]
    wp3 = wp3_ref[...]
    bp3 = bp3_ref[...]

    # Static unroll over 128-lane batch chunks so the (H, chunk) f32
    # accumulator (+ one transient) stays within the vreg file (no spills).
    for c in range(tb // chunk):
        lo = c * chunk
        xc = x_ref[:, lo:lo + chunk]            # (T*D, chunk) bf16, lane-dense
        lagc = lag_ref[:, lo:lo + chunk]        # (L, chunk)   bf16

        # --- MVSE encoder: per-timestep Linear + ReLU, f32 accumulation ----
        b1b = jnp.broadcast_to(b1, (hidden, chunk))          # hoisted broadcast
        acc = jnp.zeros((hidden, chunk), f32)
        for t in range(seq_len):                              # static unroll
            xt = xc[t * feat_dim:(t + 1) * feat_dim, :]       # (D, chunk)
            ht = jnp.dot(w1t, xt, preferred_element_type=f32) + b1b
            acc = acc + jnp.maximum(ht, 0.0)
        pooled = (acc * inv_t).astype(bf16)                   # f32 mean, one bf16 cast
        # encoder layer 2; its bias b2 is folded into bp1 downstream
        mvse = jnp.dot(w2t, pooled, preferred_element_type=f32)      # (Dout, chunk)

        # --- predictor MLP (torch.cat + Linear == split matmul) -------------
        z1 = (jnp.dot(wp1mt, mvse.astype(bf16), preferred_element_type=f32)
              + jnp.dot(wp1lt, lagc, preferred_element_type=f32)
              + bp1)
        z1 = jnp.maximum(z1, 0.0)                             # (F, chunk)
        # Dropout(0.1): identity in eval mode.
        z2 = jnp.dot(wp2t, z1.astype(bf16), preferred_element_type=f32) + bp2
        z2 = jnp.maximum(z2, 0.0)                             # (F2, chunk)
        # Final Linear(F2, 1): VPU multiply + sublane (XLU) reduce -> (1, chunk)
        pred = jnp.sum(z2 * wp3, axis=0, keepdims=True) + bp3
        out_ref[:, lo:lo + chunk] = pred.astype(out_ref.dtype)   # dense lane store


def _prepare_params(params):
    """Transpose weights for batch-on-lanes, cast to bf16, fold b2 into bp1."""
    bf16, f32 = jnp.bfloat16, jnp.float32
    bp1_folded = params["bp1"] + params["b2"] @ params["wp1_mvse"]   # (1, F) f32
    return (
        params["w1"].T.astype(bf16),        # (H, D)
        params["b1"].T.astype(f32),         # (H, 1)
        params["w2"].T.astype(bf16),        # (Dout, H)
        params["wp1_mvse"].T.astype(bf16),  # (F, Dout)
        params["wp1_lag"].T.astype(bf16),   # (F, L)
        bp1_folded.T.astype(f32),           # (F, 1)
        params["wp2"].T.astype(bf16),       # (F2, F)
        params["bp2"].T.astype(f32),        # (F2, 1)
        params["wp3"].astype(f32),          # (F2, 1) f32 for the VPU tail
        params["bp3"].astype(f32),          # (1, 1)
    )


def _round_up(v, m):
    return ((v + m - 1) // m) * m


def _choose_batch_tile(batch, block_b):
    """Lane-axis batch tile (multiple of 128) and padded batch."""
    if batch <= block_b:
        if batch >= 2 * LANE:
            # v7x has 2 TensorCores: make sure the parallel grid has >= 2 steps
            # whenever the batch is big enough to be worth splitting.
            tb = _round_up(-(-batch // 2), LANE)
        else:
            tb = _round_up(batch, LANE)
    else:
        tb = _round_up(min(block_b, batch), LANE)
    padded = _round_up(batch, tb)
    return tb, padded


def mvse_probe_forecaster(hist_seq, lag_features, params, *, block_b=1024):
    """hist_seq: (B, T, D); lag_features: (B, L) -> (B, 1) f32."""
    B, T, D = hist_seq.shape
    L = lag_features.shape[1]

    tb, Bp = _choose_batch_tile(B, block_b)
    assert tb % CHUNK == 0

    # Lane-dense, batch-on-lanes layouts (transposes/reshapes are one-time XLA ops).
    xT = hist_seq.astype(jnp.bfloat16).reshape(B, T * D).T      # (T*D, B)
    lagT = lag_features.astype(jnp.bfloat16).T                  # (L, B)
    if Bp != B:
        xT = jnp.pad(xT, ((0, 0), (0, Bp - B)))
        lagT = jnp.pad(lagT, ((0, 0), (0, Bp - B)))

    weights = _prepare_params(params)
    # Constant block index -> each weight is fetched into VMEM once, not per step.
    weight_specs = [pl.BlockSpec(w.shape, lambda i: (0, 0)) for w in weights]

    out = pl.pallas_call(
        functools.partial(_forecaster_kernel, seq_len=T, feat_dim=D, chunk=CHUNK),
        out_shape=jax.ShapeDtypeStruct((1, Bp), jnp.float32),
        grid=(Bp // tb,),
        in_specs=[
            pl.BlockSpec((T * D, tb), lambda i: (0, i)),   # history, tiled over batch lanes
            pl.BlockSpec((L, tb), lambda i: (0, i)),       # lag features
            *weight_specs,
        ],
        out_specs=pl.BlockSpec((1, tb), lambda i: (0, i)), # lane-dense output row
        compiler_params=pltpu.CompilerParams(
            dimension_semantics=("parallel",),   # shard batch tiles across v7x's 2 TCs
            vmem_limit_bytes=32 * 1024 * 1024,   # ample headroom even on v7x (64 MiB)
        ),
    )(xT, lagT, *weights)

    return out[0, :B][:, None]


def init_params(key, input_dim, mvse_d_hidden, mvse_d_out, num_lags, final_hidden):
    """Deterministic synthetic parameters (stored as (in, out) for x @ W + b)."""
    ks = jax.random.split(key, 5)

    def lin(k, fan_in, fan_out):
        kw, kb = jax.random.split(k)
        scale = 1.0 / jnp.sqrt(fan_in)
        w = jax.random.uniform(kw, (fan_in, fan_out), jnp.float32, -scale, scale)
        b = jax.random.uniform(kb, (1, fan_out), jnp.float32, -scale, scale)
        return w, b

    w1, b1 = lin(ks[0], input_dim, mvse_d_hidden)
    w2, b2 = lin(ks[1], mvse_d_hidden, mvse_d_out)
    wp1, bp1 = lin(ks[2], mvse_d_out + num_lags, final_hidden)
    wp2, bp2 = lin(ks[3], final_hidden, final_hidden // 2)
    wp3, bp3 = lin(ks[4], final_hidden // 2, 1)
    return {
        "w1": w1, "b1": b1,
        "w2": w2, "b2": b2,
        # split predictor layer-1 weight: rows [0:mvse_d_out] act on mvse
        # features, rows [mvse_d_out:] act on lag features (== concat + matmul)
        "wp1_mvse": wp1[:mvse_d_out], "wp1_lag": wp1[mvse_d_out:],
        "bp1": bp1,
        "wp2": wp2, "bp2": bp2,
        "wp3": wp3.reshape(final_hidden // 2, 1), "bp3": bp3,
    }


def _reference_f32(hist_seq, lag_features, params):
    """Pure f32 JAX reference of the PyTorch forward (semantic check)."""
    h = jnp.maximum(hist_seq @ params["w1"] + params["b1"], 0.0)
    pooled = h.mean(axis=1)
    mvse = pooled @ params["w2"] + params["b2"]
    combined = jnp.concatenate([mvse, lag_features], axis=1)
    wp1 = jnp.concatenate([params["wp1_mvse"], params["wp1_lag"]], axis=0)
    z1 = jnp.maximum(combined @ wp1 + params["bp1"], 0.0)
    z2 = jnp.maximum(z1 @ params["wp2"] + params["bp2"], 0.0)
    return z2 @ params["wp3"] + params["bp3"]


def _reference_bf16(hist_seq, lag_features, params):
    """Mirrors the kernel's transposed bf16/f32 mixed-precision math exactly."""
    (w1t, b1, w2t, wp1mt, wp1lt, bp1f, wp2t, bp2, wp3, bp3) = _prepare_params(params)
    f32, bf16 = jnp.float32, jnp.bfloat16
    B, T, D = hist_seq.shape
    xT = hist_seq.astype(bf16).reshape(B, T * D).T            # (T*D, B)
    lagT = lag_features.astype(bf16).T                        # (L, B)
    acc = jnp.zeros((w1t.shape[0], B), f32)
    for t in range(T):
        xt = xT[t * D:(t + 1) * D, :]
        acc = acc + jnp.maximum(
            jnp.dot(w1t, xt, preferred_element_type=f32) + b1, 0.0)
    pooled = (acc * (1.0 / T)).astype(bf16)
    mvse = jnp.dot(w2t, pooled, preferred_element_type=f32)
    z1 = jnp.maximum(
        jnp.dot(wp1mt, mvse.astype(bf16), preferred_element_type=f32)
        + jnp.dot(wp1lt, lagT, preferred_element_type=f32) + bp1f, 0.0)
    z2 = jnp.maximum(
        jnp.dot(wp2t, z1.astype(bf16), preferred_element_type=f32) + bp2, 0.0)
    pred = jnp.sum(z2 * wp3, axis=0, keepdims=True) + bp3
    return pred.T                                             # (B, 1)


if __name__ == "__main__":
    # small shapes consistent with the module's forward / default hyperparams
    B, T, D = 2, 8, 4
    mvse_d_hidden, mvse_d_out = 128, 32
    num_lags, final_hidden = 14, 64

    key = jax.random.PRNGKey(0)
    k_hist, k_lag, k_param = jax.random.split(key, 3)
    hist_seq = jax.random.normal(k_hist, (B, T, D), jnp.float32)
    lag_features = jax.random.normal(k_lag, (B, num_lags), jnp.float32)
    params = init_params(k_param, D, mvse_d_hidden, mvse_d_out, num_lags, final_hidden)

    out = jax.block_until_ready(mvse_probe_forecaster(hist_seq, lag_features, params))
    assert out.shape == (B, 1), out.shape
    ref16 = _reference_bf16(hist_seq, lag_features, params)
    ref32 = _reference_f32(hist_seq, lag_features, params)
    assert jnp.allclose(out, ref16, atol=2e-3, rtol=2e-3), (out, ref16)
    assert jnp.allclose(out, ref32, atol=5e-2, rtol=5e-2), (out, ref32)

    # multi-tile grid + multi-chunk inner loop + lane padding
    B2 = 600
    k_h2, k_l2 = jax.random.split(jax.random.PRNGKey(1), 2)
    hist2 = jax.random.normal(k_h2, (B2, T, D), jnp.float32)
    lag2 = jax.random.normal(k_l2, (B2, num_lags), jnp.float32)
    out2 = jax.block_until_ready(
        mvse_probe_forecaster(hist2, lag2, params, block_b=256))   # tb=256 -> grid=3
    assert out2.shape == (B2, 1), out2.shape
    ref2 = _reference_bf16(hist2, lag2, params)
    assert jnp.allclose(out2, ref2, atol=2e-3, rtol=2e-3), (out2, ref2)

    # "split one big tile into two" branch (keeps both v7x TensorCores busy)
    B3 = 300
    k_h3, k_l3 = jax.random.split(jax.random.PRNGKey(2), 2)
    hist3 = jax.random.normal(k_h3, (B3, T, D), jnp.float32)
    lag3 = jax.random.normal(k_l3, (B3, num_lags), jnp.float32)
    out3 = jax.block_until_ready(mvse_probe_forecaster(hist3, lag3, params))
    assert out3.shape == (B3, 1), out3.shape
    ref3 = _reference_bf16(hist3, lag3, params)
    assert jnp.allclose(out3, ref3, atol=2e-3, rtol=2e-3), (out3, ref3)

    print("KERNEL_OK")
</pallas_src>

<mosaic_0001>
module attributes {stable_mosaic.version = 11 : i64} {
  func.func @_forecaster_kernel(%arg0: i32, %arg1: memref<32x128xbf16, #tpu.memory_space<vmem>>, %arg2: memref<14x128xbf16, #tpu.memory_space<vmem>>, %arg3: memref<128x4xbf16, #tpu.memory_space<vmem>>, %arg4: memref<128x1xf32, #tpu.memory_space<vmem>>, %arg5: memref<32x128xbf16, #tpu.memory_space<vmem>>, %arg6: memref<64x32xbf16, #tpu.memory_space<vmem>>, %arg7: memref<64x14xbf16, #tpu.memory_space<vmem>>, %arg8: memref<64x1xf32, #tpu.memory_space<vmem>>, %arg9: memref<32x64xbf16, #tpu.memory_space<vmem>>, %arg10: memref<32x1xf32, #tpu.memory_space<vmem>>, %arg11: memref<32x1xf32, #tpu.memory_space<vmem>>, %arg12: memref<1x1xf32, #tpu.memory_space<vmem>>, %arg13: memref<1x128xf32, #tpu.memory_space<vmem>>) attributes {dimension_semantics = [#tpu.dimension_semantics<parallel>], iteration_bounds = array<i64: 1>, scalar_prefetch = 0 : i64, scratch_operands = 0 : i64, tpu.core_type = #tpu.core_type<tc>, window_params = [{transform_indices = @transform_0, window_bounds = array<i64: 32, 128>}, {transform_indices = @transform_1, window_bounds = array<i64: 14, 128>}, {pipeline_mode = #tpu.pipeline_mode<synchronous>, transform_indices = @transform_2, window_bounds = array<i64: 128, 4>}, {pipeline_mode = #tpu.pipeline_mode<synchronous>, transform_indices = @transform_3, window_bounds = array<i64: 128, 1>}, {pipeline_mode = #tpu.pipeline_mode<synchronous>, transform_indices = @transform_4, window_bounds = array<i64: 32, 128>}, {pipeline_mode = #tpu.pipeline_mode<synchronous>, transform_indices = @transform_5, window_bounds = array<i64: 64, 32>}, {pipeline_mode = #tpu.pipeline_mode<synchronous>, transform_indices = @transform_6, window_bounds = array<i64: 64, 14>}, {pipeline_mode = #tpu.pipeline_mode<synchronous>, transform_indices = @transform_7, window_bounds = array<i64: 64, 1>}, {pipeline_mode = #tpu.pipeline_mode<synchronous>, transform_indices = @transform_8, window_bounds = array<i64: 32, 64>}, {pipeline_mode = #tpu.pipeline_mode<synchronous>, transform_indices = @transform_9, window_bounds = array<i64: 32, 1>}, {pipeline_mode = #tpu.pipeline_mode<synchronous>, transform_indices = @transform_10, window_bounds = array<i64: 32, 1>}, {pipeline_mode = #tpu.pipeline_mode<synchronous>, transform_indices = @transform_11, window_bounds = array<i64: 1, 1>}, {transform_indices = @transform_12, window_bounds = array<i64: 1, 128>}]} {
    %c0 = arith.constant 0 : index
    %c0_0 = arith.constant 0 : index
    %0 = vector.load %arg3[%c0, %c0_0] : memref<128x4xbf16, #tpu.memory_space<vmem>>, vector<128x4xbf16>
    %c0_1 = arith.constant 0 : index
    %c0_2 = arith.constant 0 : index
    %1 = vector.load %arg4[%c0_1, %c0_2] : memref<128x1xf32, #tpu.memory_space<vmem>>, vector<128x1xf32>
    %c0_3 = arith.constant 0 : index
    %c0_4 = arith.constant 0 : index
    %2 = vector.load %arg5[%c0_3, %c0_4] : memref<32x128xbf16, #tpu.memory_space<vmem>>, vector<32x128xbf16>
    %c0_5 = arith.constant 0 : index
    %c0_6 = arith.constant 0 : index
    %3 = vector.load %arg6[%c0_5, %c0_6] : memref<64x32xbf16, #tpu.memory_space<vmem>>, vector<64x32xbf16>
    %c0_7 = arith.constant 0 : index
    %c0_8 = arith.constant 0 : index
    %4 = vector.load %arg7[%c0_7, %c0_8] : memref<64x14xbf16, #tpu.memory_space<vmem>>, vector<64x14xbf16>
    %c0_9 = arith.constant 0 : index
    %c0_10 = arith.constant 0 : index
    %5 = vector.load %arg8[%c0_9, %c0_10] : memref<64x1xf32, #tpu.memory_space<vmem>>, vector<64x1xf32>
    %c0_11 = arith.constant 0 : index
    %c0_12 = arith.constant 0 : index
    %6 = vector.load %arg9[%c0_11, %c0_12] : memref<32x64xbf16, #tpu.memory_space<vmem>>, vector<32x64xbf16>
    %c0_13 = arith.constant 0 : index
    %c0_14 = arith.constant 0 : index
    %7 = vector.load %arg10[%c0_13, %c0_14] : memref<32x1xf32, #tpu.memory_space<vmem>>, vector<32x1xf32>
    %c0_15 = arith.constant 0 : index
    %c0_16 = arith.constant 0 : index
    %8 = vector.load %arg11[%c0_15, %c0_16] : memref<32x1xf32, #tpu.memory_space<vmem>>, vector<32x1xf32>
    %c0_17 = arith.constant 0 : index
    %c0_18 = arith.constant 0 : index
    %9 = vector.load %arg12[%c0_17, %c0_18] : memref<1x1xf32, #tpu.memory_space<vmem>>, vector<1x1xf32>
    %c0_19 = arith.constant 0 : index
    %c0_20 = arith.constant 0 : index
    %10 = vector.load %arg1[%c0_19, %c0_20] : memref<32x128xbf16, #tpu.memory_space<vmem>>, vector<32x128xbf16>
    %c0_21 = arith.constant 0 : index
    %c0_22 = arith.constant 0 : index
    %11 = vector.load %arg2[%c0_21, %c0_22] : memref<14x128xbf16, #tpu.memory_space<vmem>>, vector<14x128xbf16>
    %12 = vector.shape_cast %1 : vector<128x1xf32> to vector<128x1xf32>
    %13 = vector.broadcast %12 : vector<128x1xf32> to vector<128x128xf32>
    %cst = arith.constant 0.000000e+00 : f32
    %14 = vector.broadcast %cst : f32 to vector<128x128xf32>
    %15 = vector.extract_strided_slice %10 {offsets = [0, 0], sizes = [4, 128], strides = [1, 1]} : vector<32x128xbf16> to vector<4x128xbf16>
    %cst_23 = arith.constant dense<0.000000e+00> : vector<128x128xf32>
    %16 = tpu.matmul %0, %15, %cst_23 {dimension_numbers = #tpu.dot_dimension_numbers<[1], [0], [0], [1], [0, 0, 1, 1], [], []>} : vector<128x4xbf16>, vector<4x128xbf16>, vector<128x128xf32> -> vector<128x128xf32>
    %17 = arith.addf %16, %13 : vector<128x128xf32>
    %cst_24 = arith.constant 0.000000e+00 : f32
    %18 = vector.broadcast %cst_24 : f32 to vector<128x128xf32>
    %19 = arith.maximumf %17, %18 : vector<128x128xf32>
    %20 = arith.addf %14, %19 : vector<128x128xf32>
    %21 = vector.extract_strided_slice %10 {offsets = [4, 0], sizes = [4, 128], strides = [1, 1]} : vector<32x128xbf16> to vector<4x128xbf16>
    %cst_25 = arith.constant dense<0.000000e+00> : vector<128x128xf32>
    %22 = tpu.matmul %0, %21, %cst_25 {dimension_numbers = #tpu.dot_dimension_numbers<[1], [0], [0], [1], [0, 0, 1, 1], [], []>} : vector<128x4xbf16>, vector<4x128xbf16>, vector<128x128xf32> -> vector<128x128xf32>
    %23 = arith.addf %22, %13 : vector<128x128xf32>
    %cst_26 = arith.constant 0.000000e+00 : f32
    %24 = vector.broadcast %cst_26 : f32 to vector<128x128xf32>
    %25 = arith.maximumf %23, %24 : vector<128x128xf32>
    %26 = arith.addf %20, %25 : vector<128x128xf32>
    %27 = vector.extract_strided_slice %10 {offsets = [8, 0], sizes = [4, 128], strides = [1, 1]} : vector<32x128xbf16> to vector<4x128xbf16>
    %cst_27 = arith.constant dense<0.000000e+00> : vector<128x128xf32>
    %28 = tpu.matmul %0, %27, %cst_27 {dimension_numbers = #tpu.dot_dimension_numbers<[1], [0], [0], [1], [0, 0, 1, 1], [], []>} : vector<128x4xbf16>, vector<4x128xbf16>, vector<128x128xf32> -> vector<128x128xf32>
    %29 = arith.addf %28, %13 : vector<128x128xf32>
    %cst_28 = arith.constant 0.000000e+00 : f32
    %30 = vector.broadcast %cst_28 : f32 to vector<128x128xf32>
    %31 = arith.maximumf %29, %30 : vector<128x128xf32>
    %32 = arith.addf %26, %31 : vector<128x128xf32>
    %33 = vector.extract_strided_slice %10 {offsets = [12, 0], sizes = [4, 128], strides = [1, 1]} : vector<32x128xbf16> to vector<4x128xbf16>
    %cst_29 = arith.constant dense<0.000000e+00> : vector<128x128xf32>
    %34 = tpu.matmul %0, %33, %cst_29 {dimension_numbers = #tpu.dot_dimension_numbers<[1], [0], [0], [1], [0, 0, 1, 1], [], []>} : vector<128x4xbf16>, vector<4x128xbf16>, vector<128x128xf32> -> vector<128x128xf32>
    %35 = arith.addf %34, %13 : vector<128x128xf32>
    %cst_30 = arith.constant 0.000000e+00 : f32
    %36 = vector.broadcast %cst_30 : f32 to vector<128x128xf32>
    %37 = arith.maximumf %35, %36 : vector<128x128xf32>
    %38 = arith.addf %32, %37 : vector<128x128xf32>
    %39 = vector.extract_strided_slice %10 {offsets = [16, 0], sizes = [4, 128], strides = [1, 1]} : vector<32x128xbf16> to vector<4x128xbf16>
    %cst_31 = arith.constant dense<0.000000e+00> : vector<128x128xf32>
    %40 = tpu.matmul %0, %39, %cst_31 {dimension_numbers = #tpu.dot_dimension_numbers<[1], [0], [0], [1], [0, 0, 1, 1], [], []>} : vector<128x4xbf16>, vector<4x128xbf16>, vector<128x128xf32> -> vector<128x128xf32>
    %41 = arith.addf %40, %13 : vector<128x128xf32>
    %cst_32 = arith.constant 0.000000e+00 : f32
    %42 = vector.broadcast %cst_32 : f32 to vector<128x128xf32>
    %43 = arith.maximumf %41, %42 : vector<128x128xf32>
    %44 = arith.addf %38, %43 : vector<128x128xf32>
    %45 = vector.extract_strided_slice %10 {offsets = [20, 0], sizes = [4, 128], strides = [1, 1]} : vector<32x128xbf16> to vector<4x128xbf16>
    %cst_33 = arith.constant dense<0.000000e+00> : vector<128x128xf32>
    %46 = tpu.matmul %0, %45, %cst_33 {dimension_numbers = #tpu.dot_dimension_numbers<[1], [0], [0], [1], [0, 0, 1, 1], [], []>} : vector<128x4xbf16>, vector<4x128xbf16>, vector<128x128xf32> -> vector<128x128xf32>
    %47 = arith.addf %46, %13 : vector<128x128xf32>
    %cst_34 = arith.constant 0.000000e+00 : f32
    %48 = vector.broadcast %cst_34 : f32 to vector<128x128xf32>
    %49 = arith.maximumf %47, %48 : vector<128x128xf32>
    %50 = arith.addf %44, %49 : vector<128x128xf32>
    %51 = vector.extract_strided_slice %10 {offsets = [24, 0], sizes = [4, 128], strides = [1, 1]} : vector<32x128xbf16> to vector<4x128xbf16>
    %cst_35 = arith.constant dense<0.000000e+00> : vector<128x128xf32>
    %52 = tpu.matmul %0, %51, %cst_35 {dimension_numbers = #tpu.dot_dimension_numbers<[1], [0], [0], [1], [0, 0, 1, 1], [], []>} : vector<128x4xbf16>, vector<4x128xbf16>, vector<128x128xf32> -> vector<128x128xf32>
    %53 = arith.addf %52, %13 : vector<128x128xf32>
    %cst_36 = arith.constant 0.000000e+00 : f32
    %54 = vector.broadcast %cst_36 : f32 to vector<128x128xf32>
    %55 = arith.maximumf %53, %54 : vector<128x128xf32>
    %56 = arith.addf %50, %55 : vector<128x128xf32>
    %57 = vector.extract_strided_slice %10 {offsets = [28, 0], sizes = [4, 128], strides = [1, 1]} : vector<32x128xbf16> to vector<4x128xbf16>
    %cst_37 = arith.constant dense<0.000000e+00> : vector<128x128xf32>
    %58 = tpu.matmul %0, %57, %cst_37 {dimension_numbers = #tpu.dot_dimension_numbers<[1], [0], [0], [1], [0, 0, 1, 1], [], []>} : vector<128x4xbf16>, vector<4x128xbf16>, vector<128x128xf32> -> vector<128x128xf32>
    %59 = arith.addf %58, %13 : vector<128x128xf32>
    %cst_38 = arith.constant 0.000000e+00 : f32
    %60 = vector.broadcast %cst_38 : f32 to vector<128x128xf32>
    %61 = arith.maximumf %59, %60 : vector<128x128xf32>
    %62 = arith.addf %56, %61 : vector<128x128xf32>
    %cst_39 = arith.constant 1.250000e-01 : f32
    %63 = vector.broadcast %cst_39 : f32 to vector<128x128xf32>
    %64 = arith.mulf %62, %63 : vector<128x128xf32>
    %65 = arith.truncf %64 : vector<128x128xf32> to vector<128x128xbf16>
    %cst_40 = arith.constant dense<0.000000e+00> : vector<32x128xf32>
    %66 = tpu.matmul %2, %65, %cst_40 {dimension_numbers = #tpu.dot_dimension_numbers<[1], [0], [0], [1], [0, 0, 1, 1], [], []>} : vector<32x128xbf16>, vector<128x128xbf16>, vector<32x128xf32> -> vector<32x128xf32>
    %67 = arith.truncf %66 : vector<32x128xf32> to vector<32x128xbf16>
    %cst_41 = arith.constant dense<0.000000e+00> : vector<64x128xf32>
    %68 = tpu.matmul %3, %67, %cst_41 {dimension_numbers = #tpu.dot_dimension_numbers<[1], [0], [0], [1], [0, 0, 1, 1], [], []>} : vector<64x32xbf16>, vector<32x128xbf16>, vector<64x128xf32> -> vector<64x128xf32>
    %cst_42 = arith.constant dense<0.000000e+00> : vector<64x128xf32>
    %69 = tpu.matmul %4, %11, %cst_42 {dimension_numbers = #tpu.dot_dimension_numbers<[1], [0], [0], [1], [0, 0, 1, 1], [], []>} : vector<64x14xbf16>, vector<14x128xbf16>, vector<64x128xf32> -> vector<64x128xf32>
    %70 = arith.addf %68, %69 : vector<64x128xf32>
    %71 = vector.broadcast %5 : vector<64x1xf32> to vector<64x128xf32>
    %72 = arith.addf %70, %71 : vector<64x128xf32>
    %cst_43 = arith.constant 0.000000e+00 : f32
    %73 = vector.broadcast %cst_43 : f32 to vector<64x128xf32>
    %74 = arith.maximumf %72, %73 : vector<64x128xf32>
    %75 = arith.truncf %74 : vector<64x128xf32> to vector<64x128xbf16>
    %cst_44 = arith.constant dense<0.000000e+00> : vector<32x128xf32>
    %76 = tpu.matmul %6, %75, %cst_44 {dimension_numbers = #tpu.dot_dimension_numbers<[1], [0], [0], [1], [0, 0, 1, 1], [], []>} : vector<32x64xbf16>, vector<64x128xbf16>, vector<32x128xf32> -> vector<32x128xf32>
    %77 = vector.broadcast %7 : vector<32x1xf32> to vector<32x128xf32>
    %78 = arith.addf %76, %77 : vector<32x128xf32>
    %cst_45 = arith.constant 0.000000e+00 : f32
    %79 = vector.broadcast %cst_45 : f32 to vector<32x128xf32>
    %80 = arith.maximumf %78, %79 : vector<32x128xf32>
    %81 = vector.broadcast %8 : vector<32x1xf32> to vector<32x128xf32>
    %82 = arith.mulf %80, %81 : vector<32x128xf32>
    %cst_46 = arith.constant dense<0.000000e+00> : vector<128xf32>
    %83 = vector.multi_reduction <add>, %82, %cst_46 [0] : vector<32x128xf32> to vector<128xf32>
    %84 = vector.shape_cast %83 : vector<128xf32> to vector<1x128xf32>
    %85 = vector.broadcast %9 : vector<1x1xf32> to vector<1x128xf32>
    %86 = arith.addf %84, %85 : vector<1x128xf32>
    %c0_47 = arith.constant 0 : index
    %c0_48 = arith.constant 0 : index
    %87 = vector.load %arg13[%c0_47, %c0_48] : memref<1x128xf32, #tpu.memory_space<vmem>>, vector<1x128xf32>
    tpu.vector_store %arg13[%c0_47, %c0_48], %86 {strides = array<i32>} : memref<1x128xf32, #tpu.memory_space<vmem>>, vector<1x128xf32>,
    return
  }
  func.func @transform_0(%arg0: i32) -> (i32, i32) {
    %c0_i32 = arith.constant 0 : i32
    %c0_i32_0 = arith.constant 0 : i32
    return %c0_i32, %arg0 : i32, i32
  }
  func.func @transform_1(%arg0: i32) -> (i32, i32) {
    %c0_i32 = arith.constant 0 : i32
    %c0_i32_0 = arith.constant 0 : i32
    return %c0_i32, %arg0 : i32, i32
  }
  func.func @transform_2(%arg0: i32) -> (i32, i32) {
    %c0_i32 = arith.constant 0 : i32
    %c0_i32_0 = arith.constant 0 : i32
    %c0_i32_1 = arith.constant 0 : i32
    return %c0_i32, %c0_i32_0 : i32, i32
  }
  func.func @transform_3(%arg0: i32) -> (i32, i32) {
    %c0_i32 = arith.constant 0 : i32
    %c0_i32_0 = arith.constant 0 : i32
    %c0_i32_1 = arith.constant 0 : i32
    return %c0_i32, %c0_i32_0 : i32, i32
  }
  func.func @transform_4(%arg0: i32) -> (i32, i32) {
    %c0_i32 = arith.constant 0 : i32
    %c0_i32_0 = arith.constant 0 : i32
    %c0_i32_1 = arith.constant 0 : i32
    return %c0_i32, %c0_i32_0 : i32, i32
  }
  func.func @transform_5(%arg0: i32) -> (i32, i32) {
    %c0_i32 = arith.constant 0 : i32
    %c0_i32_0 = arith.constant 0 : i32
    %c0_i32_1 = arith.constant 0 : i32
    return %c0_i32, %c0_i32_0 : i32, i32
  }
  func.func @transform_6(%arg0: i32) -> (i32, i32) {
    %c0_i32 = arith.constant 0 : i32
    %c0_i32_0 = arith.constant 0 : i32
    %c0_i32_1 = arith.constant 0 : i32
    return %c0_i32, %c0_i32_0 : i32, i32
  }
  func.func @transform_7(%arg0: i32) -> (i32, i32) {
    %c0_i32 = arith.constant 0 : i32
    %c0_i32_0 = arith.constant 0 : i32
    %c0_i32_1 = arith.constant 0 : i32
    return %c0_i32, %c0_i32_0 : i32, i32
  }
  func.func @transform_8(%arg0: i32) -> (i32, i32) {
    %c0_i32 = arith.constant 0 : i32
    %c0_i32_0 = arith.constant 0 : i32
    %c0_i32_1 = arith.constant 0 : i32
    return %c0_i32, %c0_i32_0 : i32, i32
  }
  func.func @transform_9(%arg0: i32) -> (i32, i32) {
    %c0_i32 = arith.constant 0 : i32
    %c0_i32_0 = arith.constant 0 : i32
    %c0_i32_1 = arith.constant 0 : i32
    return %c0_i32, %c0_i32_0 : i32, i32
  }
  func.func @transform_10(%arg0: i32) -> (i32, i32) {
    %c0_i32 = arith.constant 0 : i32
    %c0_i32_0 = arith.constant 0 : i32
    %c0_i32_1 = arith.constant 0 : i32
    return %c0_i32, %c0_i32_0 : i32, i32
  }
  func.func @transform_11(%arg0: i32) -> (i32, i32) {
    %c0_i32 = arith.constant 0 : i32
    %c0_i32_0 = arith.constant 0 : i32
    %c0_i32_1 = arith.constant 0 : i32
    return %c0_i32, %c0_i32_0 : i32, i32
  }
  func.func @transform_12(%arg0: i32) -> (i32, i32) {
    %c0_i32 = arith.constant 0 : i32
    %c0_i32_0 = arith.constant 0 : i32
    return %c0_i32, %arg0 : i32, i32
  }
}

</mosaic_0001>

<bundles_post_ra>
// kernel: tpu_custom_call.1
= control target key start
LH: loop header
LB: loop body
LE: loop exit
PB: predicated region body
PF: predicated region fallthrough
CT: control target
= control target key end

     0   :  { %s2242_s0 = inlined_call_operand.vmem [shape: bf16[32,128], index: 0, kind: input, shape index: {}]   ;;  %s2243_s1 = inlined_call_operand.vmem [shape: bf16[14,128], index: 1, kind: input, shape index: {}]   ;;  %s2244_s2 = inlined_call_operand.vmem [shape: bf16[128,4], index: 2, kind: input, shape index: {}]   ;;  %s2245_s3 = inlined_call_operand.vmem [shape: f32[128,1], index: 3, kind: input, shape index: {}]   ;;  %s2246_s4 = inlined_call_operand.vmem [shape: bf16[32,128], index: 4, kind: input, shape index: {}]   ;;  %s2247_s5 = inlined_call_operand.vmem [shape: bf16[64,32], index: 5, kind: input, shape index: {}]   ;;  %s2248_s6 = inlined_call_operand.vmem [shape: bf16[64,14], index: 6, kind: input, shape index: {}]   ;;  %s2249_s7 = inlined_call_operand.vmem [shape: f32[64,1], index: 7, kind: input, shape index: {}]   ;;  %s2250_s8 = inlined_call_operand.vmem [shape: bf16[32,64], index: 8, kind: input, shape index: {}]   ;;  %s2251_s9 = inlined_call_operand.vmem [shape: f32[32,1], index: 9, kind: input, shape index: {}]   ;;  %s2252_s10 = inlined_call_operand.vmem [shape: f32[32,1], index: 10, kind: input, shape index: {}]   ;;  %s2253_s11 = inlined_call_operand.<no memory space> [shape: f32[1,1], index: 11, kind: input, shape index: {}]   ;;  %s2254_s12 = inlined_call_operand.hbm [shape: f32[1,128], index: 12, kind: output, shape index: {}]  }
   0x1   :  { %v17_v0 = vstv %s2253_s11 }
   0x2   :  { %18 = vst [vmem:[#allocation2] sm:$0x1] %v17_v0 }
   0x3   :  { %v118_v1 = vld [vmem:[%s2242_s0] sm:$0xf]  ;;  %vm269_vm0 = vcmask 1041408   ;;  %v119_v2 = vld [vmem:[%s2242_s0 + $0x4] sm:$0xf]  ;;  %v1537_v3 = vmov 0  }
   0x4   :  { %1508 = vset.pattern.permute.xlu0 %v1537_v3  ;;  %v271_v4 = vsel %vm269_vm0, %v118_v1, 0  ;;  %v355_v5 = vunpack.c.l.b16 %v118_v1  ;;  %v443_v6 = vsel %vm269_vm0, %v119_v2, 0  ;;  %v527_v7 = vunpack.c.l.b16 %v119_v2  ;;  %v75_v8 = vld [vmem:[%s2245_s3 + $0x70] sm:$0xff]  ;;  %v1621_v9 = vld [vmem:[%s2244_s2] sm:$0xff]  ;;  %1510 = vset.pattern.permute.xlu2 %v1537_v3  ;;  %v1626_v10 = vld [vmem:[%s2244_s2 + $0x38] sm:$0xff] }
   0x5   :  { %280 = vmatpush.bf16.msra.mxu0 %v271_v4  ;;  %452 = vmatpush.bf16.msra.mxu2 %v443_v6  ;;  %vm244_vm1 = vcmask 31744   ;;  %v71_v11 = vld [vmem:[%s2245_s3 + $0x50] sm:$0xff]  ;;  %v73_v13 = vld [vmem:[%s2245_s3 + $0x60] sm:$0xff]  ;;  %v1645_v19 = vld [vmem:[%s2244_s2 + $0x8] sm:$0xff] }
   0x6   :  { %v356_v12 = vpack.c.b16 %v355_v5, %v355_v5  ;;  %1505 = vmatpush.bf16.msra.mxu3 %v443_v6  ;;  %196 = vperm.xlu0 %1508, %v75_v8   ;;  %v528_v14 = vpack.c.b16 %v527_v7, %v527_v7 }
   0x7   :  { %1509 = vset.pattern.permute.xlu1 %v1537_v3  ;;  %176 = vperm.xlu2 %1510, %v71_v11  }
   0x8   :  { %1357 = vmatmul.msk.bf16.vlgmr.msra.gmra.mxu0 %vm244_vm1, %v1621_v9  ;;  %1373 = vmatmul.msk.bf16.vlgmr.msra.gmra.mxu2 %vm244_vm1, %v1621_v9  ;;  %v357_v15 = vrot.slane %v356_v12, 2  ;;  %v529_v16 = vrot.slane %v528_v14, 2 }
   0x9   :  { %1380 = vmatmul.msk.bf16.vlgmr.msra.gmra.mxu3 %vm244_vm1, %v1626_v10  ;;  %186 = vperm.xlu1 %1509, %v73_v13  }
   0xa   :  { %v359_v17 = vsel %vm269_vm0, %v357_v15, 0  ;;  %v531_v18 = vsel %vm269_vm0, %v529_v16, 0 }
   0xb   :  { %19 = vsyncpa [#allocation4], 0  ;;  %v76_v20 = vld [vmem:[%s2245_s3 + $0x78] sm:$0xff]  ;;  %1504 = vmatpush.bf16.msra.mxu1 %v359_v17  ;;  %540 = vmatpush.bf16.msrb.mxu3 %v531_v18  ;;  %v74_v22 = vld [vmem:[%s2245_s3 + $0x68] sm:$0xff]  ;;  %vm1053_vm2 = vcmask 1046528   ;;  %vm1040_vm3 = vcmask 113664  }
   0xc   :  { %v72_v21 = vld [vmem:[%s2245_s3 + $0x58] sm:$0xff]  ;;  %368 = vmatpush.bf16.msrb.mxu0 %v359_v17  ;;  %v69_v23 = vld [vmem:[%s2245_s3 + $0x40] sm:$0xff]  ;;  %v67_v24 = vld [vmem:[%s2245_s3 + $0x30] sm:$0xff]  ;;  %vm1106_vm4 = vcmask 261120   ;;  %vm1238_vm5 = vcmask 523264   ;;  %s1316_s11 = sshll.u32 %s2254_s12, 4  ;;  %s1317_s11 = int_to_ptr.hbm [resolvable:$true] %s1316_s11 }
   0xd   :  { %v70_v25 = vld [vmem:[%s2245_s3 + $0x48] sm:$0xff]  ;;  %v1676_v26 = vld [vmem:[%s2244_s2 + $0x10] sm:$0xff]  ;;  %v68_v27 = vld [vmem:[%s2245_s3 + $0x38] sm:$0xff] }
   0xe   :  { %201 = vperm.xlu0 %1508, %v76_v20   ;;  %1366 = vmatmul.msk.bf16.vlgmr.msra.gmra.mxu1 %vm244_vm1, %v1645_v19  ;;  %v66_v28 = vld [vmem:[%s2245_s3 + $0x28] sm:$0xff]  ;;  %v65_v29 = vld [vmem:[%s2245_s3 + $0x20] sm:$0xff]  ;;  %v63_v30 = vld [vmem:[%s2245_s3 + $0x10] sm:$0xff] }
   0xf   :  { %181 = vperm.xlu2 %1510, %v72_v21   ;;  %v61_v31 = vld [vmem:[%s2245_s3] sm:$0xff]  ;;  %v64_v32 = vld [vmem:[%s2245_s3 + $0x18] sm:$0xff]  ;;  %v62_v34 = vld [vmem:[%s2245_s3 + $0x8] sm:$0xff] }
  0x10   :  { %v1707_v33 = vld [vmem:[%s2244_s2 + $0x18] sm:$0xff]  ;;  %v1723_v35 = vld [vmem:[%s2244_s2 + $0x20] sm:$0xff]  ;;  %v1736_v36 = vld [vmem:[%s2244_s2 + $0x28] sm:$0xff] }
  0x11   :  { %191 = vperm.xlu1 %1509, %v74_v22   ;;  %v121_v37 = vld [vmem:[%s2242_s0 + $0xc] sm:$0xf]  ;;  %v1752_v38 = vld [vmem:[%s2244_s2 + $0x30] sm:$0xff]  ;;  %v120_v40 = vld [vmem:[%s2242_s0 + $0x8] sm:$0xf] }
  0x12   :  { %v787_v39 = vsel %vm269_vm0, %v121_v37, 0  ;;  %v699_v41 = vunpack.c.l.b16 %v120_v40  ;;  %v871_v45 = vunpack.c.l.b16 %v121_v37  ;;  %v615_v49 = vsel %vm269_vm0, %v120_v40, 0 }
  0x13   :  { %796 = vmatpush.bf16.msrb.mxu2 %v787_v39  ;;  %624 = vmatpush.bf16.msra.mxu0 %v615_v49 }
  0x14   :  { %v700_v42 = vpack.c.b16 %v699_v41, %v699_v41  ;;  %v872_v46 = vpack.c.b16 %v871_v45, %v871_v45 }
  0x16   :  { %166 = vperm.xlu0 %1508, %v69_v23   ;;  %v701_v43 = vrot.slane %v700_v42, 2  ;;  %v873_v47 = vrot.slane %v872_v46, 2 }
  0x17   :  { %156 = vperm.xlu2 %1510, %v67_v24  }
  0x18   :  { %1358 = vmatmul.msk.bf16.gmra.mxu0 %vm244_vm1, %v1645_v19  ;;  %1374 = vmatmul.msk.bf16.gmra.mxu2 %vm244_vm1, %v1645_v19  ;;  %v703_v44 = vsel %vm269_vm0, %v701_v43, 0  ;;  %v875_v48 = vsel %vm269_vm0, %v873_v47, 0 }
  0x19   :  { %1381 = vmatmul.msk.bf16.vlgmr.msrb.gmra.mxu3 %vm244_vm1, %v1621_v9  ;;  %171 = vperm.xlu1 %1509, %v70_v25  }
  0x1a   :  { %712 = vmatpush.bf16.msrb.mxu1 %v703_v44  ;;  %884 = vmatpush.bf16.msra.mxu3 %v875_v48 }
  0x1e   :  { %161 = vperm.xlu0 %1508, %v68_v27   ;;  %1367 = vmatmul.msk.bf16.gmra.mxu1 %vm244_vm1, %v1676_v26 }
  0x1f   :  { %151 = vperm.xlu2 %1510, %v66_v28  }
  0x21   :  { %146 = vperm.xlu1 %1509, %v65_v29  }
  0x26   :  { %136 = vperm.xlu0 %1508, %v63_v30  }
  0x27   :  { %126 = vperm.xlu2 %1510, %v61_v31  }
  0x28   :  { %1359 = vmatmul.msk.bf16.gmra.mxu0 %vm244_vm1, %v1676_v26  ;;  %1375 = vmatmul.msk.bf16.gmra.mxu2 %vm244_vm1, %v1676_v26 }
  0x29   :  { %1382 = vmatmul.msk.bf16.gmra.mxu3 %vm244_vm1, %v1645_v19  ;;  %141 = vperm.xlu1 %1509, %v64_v32  }
  0x2e   :  { %131 = vperm.xlu0 %1508, %v62_v34   ;;  %1368 = vmatmul.msk.bf16.gmra.mxu1 %vm244_vm1, %v1707_v33 }
  0x38   :  { %1360 = vmatmul.msk.bf16.gmra.mxu0 %vm244_vm1, %v1707_v33  ;;  %1376 = vmatmul.msk.bf16.gmra.mxu2 %vm244_vm1, %v1707_v33 }
  0x39   :  { %1383 = vmatmul.msk.bf16.gmra.mxu3 %vm244_vm1, %v1676_v26 }
  0x3e   :  { %1369 = vmatmul.msk.bf16.gmra.mxu1 %vm244_vm1, %v1723_v35 }
  0x48   :  { %1361 = vmatmul.msk.bf16.gmra.mxu0 %vm244_vm1, %v1723_v35  ;;  %1377 = vmatmul.msk.bf16.gmra.mxu2 %vm244_vm1, %v1723_v35 }
  0x49   :  { %1384 = vmatmul.msk.bf16.gmra.mxu3 %vm244_vm1, %v1707_v33 }
  0x4e   :  { %1370 = vmatmul.msk.bf16.gmra.mxu1 %vm244_vm1, %v1736_v36 }
  0x58   :  { %1362 = vmatmul.msk.bf16.gmra.mxu0 %vm244_vm1, %v1736_v36  ;;  %1378 = vmatmul.msk.bf16.gmra.mxu2 %vm244_vm1, %v1736_v36 }
  0x59   :  { %1385 = vmatmul.msk.bf16.gmra.mxu3 %vm244_vm1, %v1723_v35 }
  0x5e   :  { %1371 = vmatmul.msk.bf16.gmra.mxu1 %vm244_vm1, %v1752_v38 }
  0x61   :  { %v1797_v56 = vpop.permute.xlu2 %176 }
  0x62   :  { %2263 = vst [vmem:[#allocation8_spill] sm:$0xff] %v1797_v56 }
  0x68   :  { %1363 = vmatmul.msk.bf16.gmra.mxu0 %vm244_vm1, %v1752_v38  ;;  %1379 = vmatmul.msk.bf16.gmra.mxu2 %vm244_vm1, %v1752_v38 }
  0x69   :  { %1386 = vmatmul.msk.bf16.gmra.mxu3 %vm244_vm1, %v1736_v36  ;;  %v1817_v3 = vpop.permute.xlu2 %181 }
  0x6e   :  { %1372 = vmatmul.msk.bf16.gmra.mxu1 %vm244_vm1, %v1626_v10 }
  0x71   :  { %v1838_v23 = vpop.permute.xlu2 %156 }
  0x78   :  { %v1771_v50 = vpop.permute.xlu0 %196  ;;  %1364 = vmatmul.msk.bf16.gmra.mxu0 %vm244_vm1, %v1626_v10  ;;  %1405 = vmatmul.msk.bf16.vlgmr.msrb.gmra.mxu2 %vm244_vm1, %v1621_v9 }
  0x79   :  { %2261 = vst [vmem:[#allocation6_spill] sm:$0xff] %v1771_v50  ;;  %1387 = vmatmul.msk.bf16.gmra.mxu3 %vm244_vm1, %v1752_v38  ;;  %v1849_v43 = vpop.permute.xlu2 %151 }
  0x7b   :  { %v1779_v51 = vpop.permute.xlu1 %186 }
  0x7e   :  { %1397 = vmatmul.msk.bf16.vlgmr.msrb.gmra.mxu1 %vm244_vm1, %v1621_v9 }
  0x80   :  { %v1783_v52 = vpop.permute.xlu0 %201 }
  0x81   :  { %2262 = vst [vmem:[#allocation7_spill] sm:$0xff] %v1783_v52 }
  0x83   :  { %v1785_v53 = vpop.permute.xlu1 %191 }
  0x85   :  { %v1787_v54 = vpop.f32.mrf.mxu0 }
  0x88   :  { %v1789_v55 = vpop.permute.xlu0 %166  ;;  %1365 = vmatmul.msk.bf16.vlgmr.msrb.gmra.mxu0 %vm244_vm1, %v1621_v9  ;;  %1406 = vmatmul.msk.bf16.gmra.mxu2 %vm244_vm1, %v1645_v19 }
  0x89   :  { %1388 = vmatmul.msk.bf16.gmra.mxu3 %vm244_vm1, %v1626_v10 }
  0x8b   :  { %v1799_v57 = vpop.f32.mrf.mxu2  ;;  %v1801_v58 = vpop.permute.xlu1 %171 }
  0x8c   :  { %v1803_v59 = vpop.f32.mrf.mxu3  ;;  %v375_v60 = vpop.f32.mrf.mxu1 }
  0x8d   :  { %v1805_v61 = vpop.f32.mrf.mxu0 }
  0x8e   :  { %1398 = vmatmul.msk.bf16.gmra.mxu1 %vm244_vm1, %v1645_v19 }
  0x90   :  { %v1809_v62 = vpop.permute.xlu0 %161 }
  0x93   :  { %v1811_v63 = vpop.f32.mrf.mxu2  ;;  %v1813_v0 = vpop.permute.xlu1 %146 }
  0x94   :  { %v1815_v1 = vpop.f32.mrf.mxu3  ;;  %v377_v2 = vpop.f32.mrf.mxu1 }
  0x95   :  { %v287_v4 = vpop.f32.mrf.mxu0 }
  0x98   :  { %v1819_v5 = vpop.permute.xlu0 %136  ;;  %1389 = vmatmul.msk.bf16.vlgmr.msra.gmra.mxu0 %vm244_vm1, %v1621_v9  ;;  %1407 = vmatmul.msk.bf16.gmra.mxu2 %vm244_vm1, %v1676_v26 }
  0x99   :  { %1413 = vmatmul.msk.bf16.vlgmr.msra.gmra.mxu3 %vm244_vm1, %v1621_v9  ;;  %v288_v6 = vadd.f32 %v287_v4, %v1819_v5  ;;  %v376_v7 = vadd.f32 %v375_v60, %v1819_v5 }
  0x9b   :  { %v324_v8 = vmax.f32 %v288_v6, 0.0  ;;  %v412_v11 = vmax.f32 %v376_v7, 0.0  ;;  %v459_v12 = vpop.f32.mrf.mxu2  ;;  %v1829_v13 = vpop.permute.xlu1 %141 }
  0x9c   :  { %v460_v14 = vadd.f32 %v459_v12, %v1819_v5  ;;  %v1832_v15 = vpop.f32.mrf.mxu3  ;;  %v378_v16 = vadd.f32 %v377_v2, %v1829_v13  ;;  %v380_v17 = vpop.f32.mrf.mxu1 }
  0x9d   :  { %v428_v18 = vadd.f32 %v412_v11, %v324_v8  ;;  %v289_v20 = vpop.f32.mrf.mxu0  ;;  %v381_v28 = vadd.f32 %v380_v17, %v1813_v0 }
  0x9e   :  { %v496_v21 = vmax.f32 %v460_v14, 0.0  ;;  %v290_v9 = vadd.f32 %v289_v20, %v1829_v13  ;;  %v413_v22 = vmax.f32 %v378_v16, 0.0  ;;  %1399 = vmatmul.msk.bf16.gmra.mxu1 %vm244_vm1, %v1676_v26 }
  0x9f   :  { %v414_v37 = vmax.f32 %v381_v28, 0.0 }
  0xa0   :  { %v512_v24 = vadd.f32 %v496_v21, %v428_v18  ;;  %v325_v25 = vmax.f32 %v290_v9, 0.0 }
  0xa2   :  { %v429_v27 = vadd.f32 %v413_v22, %v325_v25 }
  0xa3   :  { %v461_v29 = vpop.f32.mrf.mxu2 }
  0xa4   :  { %v462_v30 = vadd.f32 %v461_v29, %v1829_v13  ;;  %v1842_v31 = vpop.f32.mrf.mxu3  ;;  %v382_v32 = vpop.f32.mrf.mxu1 }
  0xa5   :  { %v292_v34 = vpop.f32.mrf.mxu0  ;;  %v383_v45 = vadd.f32 %v382_v32, %v1849_v43 }
  0xa6   :  { %v497_v39 = vmax.f32 %v462_v30, 0.0  ;;  %v293_v40 = vadd.f32 %v292_v34, %v1813_v0 }
  0xa7   :  { %v415_v4 = vmax.f32 %v383_v45, 0.0 }
  0xa8   :  { %v513_v41 = vadd.f32 %v497_v39, %v429_v27  ;;  %v326_v42 = vmax.f32 %v293_v40, 0.0  ;;  %1390 = vmatmul.msk.bf16.gmra.mxu0 %vm244_vm1, %v1645_v19  ;;  %1408 = vmatmul.msk.bf16.gmra.mxu2 %vm244_vm1, %v1707_v33 }
  0xa9   :  { %1414 = vmatmul.msk.bf16.gmra.mxu3 %vm244_vm1, %v1645_v19 }
  0xaa   :  { %v430_v44 = vadd.f32 %v414_v37, %v326_v42 }
  0xab   :  { %v464_v46 = vpop.f32.mrf.mxu2 }
  0xac   :  { %v465_v47 = vadd.f32 %v464_v46, %v1813_v0  ;;  %v547_v48 = vpop.f32.mrf.mxu3  ;;  %v385_v49 = vpop.f32.mrf.mxu1 }
  0xad   :  { %v548_v60 = vadd.f32 %v547_v48, %v1819_v5  ;;  %v294_v2 = vpop.f32.mrf.mxu0  ;;  %v386_v16 = vadd.f32 %v385_v49, %v1838_v23 }
  0xae   :  { %v498_v6 = vmax.f32 %v465_v47, 0.0  ;;  %v295_v7 = vadd.f32 %v294_v2, %v1849_v43  ;;  %1400 = vmatmul.msk.bf16.gmra.mxu1 %vm244_vm1, %v1707_v33 }
  0xaf   :  { %v584_v8 = vmax.f32 %v548_v60, 0.0  ;;  %v416_v25 = vmax.f32 %v386_v16, 0.0 }
  0xb0   :  { %v514_v19 = vadd.f32 %v498_v6, %v430_v44  ;;  %v327_v11 = vmax.f32 %v295_v7, 0.0 }
  0xb1   :  { %v1859_v12 = vadd.f32 %v584_v8, %v512_v24 }
  0xb2   :  { %v431_v14 = vadd.f32 %v415_v4, %v327_v11 }
  0xb3   :  { %v466_v17 = vpop.f32.mrf.mxu2 }
  0xb4   :  { %v467_v18 = vadd.f32 %v466_v17, %v1849_v43  ;;  %v549_v20 = vpop.f32.mrf.mxu3  ;;  %v387_v21 = vpop.f32.mrf.mxu1  ;;  %v103_v17 = vld [vmem:[%s2249_s7 + $0x30] sm:$0xff] }
  0xb5   :  { %v550_v9 = vadd.f32 %v549_v20, %v1829_v13  ;;  %v297_v22 = vpop.f32.mrf.mxu0  ;;  %v388_v37 = vadd.f32 %v387_v21, %v1809_v62  ;;  %1180 = vperm.xlu1 %1509, %v103_v17  }
  0xb6   :  { %v499_v27 = vmax.f32 %v467_v18, 0.0  ;;  %v298_v28 = vadd.f32 %v297_v22, %v1838_v23  ;;  %v101_v22 = vld [vmem:[%s2249_s7 + $0x20] sm:$0xff] }
  0xb7   :  { %v585_v29 = vmax.f32 %v550_v9, 0.0  ;;  %v417_v47 = vmax.f32 %v388_v37, 0.0  ;;  %1170 = vperm.xlu0 %1508, %v101_v22  }
  0xb8   :  { %v515_v30 = vadd.f32 %v499_v27, %v431_v14  ;;  %v328_v32 = vmax.f32 %v298_v28, 0.0  ;;  %1391 = vmatmul.msk.bf16.gmra.mxu0 %vm244_vm1, %v1676_v26  ;;  %1409 = vmatmul.msk.bf16.gmra.mxu2 %vm244_vm1, %v1723_v35 }
  0xb9   :  { %v1869_v24 = vadd.f32 %v585_v29, %v513_v41  ;;  %1415 = vmatmul.msk.bf16.gmra.mxu3 %vm244_vm1, %v1676_v26 }
  0xba   :  { %v432_v34 = vadd.f32 %v416_v25, %v328_v32 }
  0xbb   :  { %v469_v39 = vpop.f32.mrf.mxu2 }
  0xbc   :  { %v470_v40 = vadd.f32 %v469_v39, %v1838_v23  ;;  %v552_v42 = vpop.f32.mrf.mxu3  ;;  %v390_v44 = vpop.f32.mrf.mxu1 }
  0xbd   :  { %v553_v45 = vadd.f32 %v552_v42, %v1813_v0  ;;  %v299_v46 = vpop.f32.mrf.mxu0  ;;  %v391_v6 = vadd.f32 %v390_v44, %v1789_v55 }
  0xbe   :  { %v500_v48 = vmax.f32 %v470_v40, 0.0  ;;  %v300_v49 = vadd.f32 %v299_v46, %v1809_v62  ;;  %1401 = vmatmul.msk.bf16.gmra.mxu1 %vm244_vm1, %v1723_v35 }
  0xbf   :  { %v586_v41 = vmax.f32 %v553_v45, 0.0  ;;  %v418_v18 = vmax.f32 %v391_v6, 0.0  ;;  %v100_v45 = vld [vmem:[%s2249_s7 + $0x18] sm:$0xff] }
  0xc0   :  { %v516_v26 = vadd.f32 %v500_v48, %v432_v34  ;;  %v329_v60 = vmax.f32 %v300_v49, 0.0  ;;  %1165 = vperm.xlu0 %1508, %v100_v45  }
  0xc1   :  { %v1879_v2 = vadd.f32 %v586_v41, %v514_v19 }
  0xc2   :  { %v433_v4 = vadd.f32 %v417_v47, %v329_v60 }
  0xc3   :  { %v471_v7 = vpop.f32.mrf.mxu2 }
  0xc4   :  { %v554_v8 = vpop.f32.mrf.mxu3  ;;  %v1882_v11 = vpop.f32.mrf.mxu1  ;;  %v472_v39 = vadd.f32 %v471_v7, %v1809_v62 }
  0xc5   :  { %v555_v14 = vadd.f32 %v554_v8, %v1849_v43  ;;  %v302_v16 = vpop.f32.mrf.mxu0 }
  0xc6   :  { %v303_v20 = vadd.f32 %v302_v16, %v1789_v55  ;;  %v501_v47 = vmax.f32 %v472_v39, 0.0  ;;  %v104_v39 = vld [vmem:[%s2249_s7 + $0x38] sm:$0xff] }
  0xc7   :  { %v587_v19 = vmax.f32 %v555_v14, 0.0  ;;  %1185 = vperm.xlu2 %1510, %v104_v39  }
  0xc8   :  { %v330_v21 = vmax.f32 %v303_v20, 0.0  ;;  %1392 = vmatmul.msk.bf16.gmra.mxu0 %vm244_vm1, %v1707_v33  ;;  %1410 = vmatmul.msk.bf16.gmra.mxu2 %vm244_vm1, %v1736_v36  ;;  %v517_v14 = vadd.f32 %v501_v47, %v433_v4  ;;  %v109_v20 = vld [vmem:[%s2251_s9] sm:$0xff] }
  0xc9   :  { %v1893_v9 = vadd.f32 %v587_v19, %v515_v30  ;;  %1416 = vmatmul.msk.bf16.gmra.mxu3 %vm244_vm1, %v1707_v33  ;;  %v102_v30 = vld [vmem:[%s2249_s7 + $0x28] sm:$0xff]  ;;  %1210 = vperm.xlu0 %1508, %v109_v20  }
  0xca   :  { %v434_v25 = vadd.f32 %v418_v18, %v330_v21  ;;  %1175 = vperm.xlu1 %1509, %v102_v30  }
  0xcb   :  { %v474_v27 = vpop.f32.mrf.mxu2 }
  0xcc   :  { %v475_v28 = vadd.f32 %v474_v27, %v1789_v55  ;;  %v557_v29 = vpop.f32.mrf.mxu3  ;;  %v395_v32 = vpop.f32.mrf.mxu1 }
  0xcd   :  { %v558_v34 = vadd.f32 %v557_v29, %v1838_v23  ;;  %v1902_v37 = vpop.f32.mrf.mxu0  ;;  %v396_v46 = vadd.f32 %v395_v32, %v1797_v56  ;;  %v110_v29 = vld [vmem:[%s2251_s9 + $0x8] sm:$0xff] }
  0xce   :  { %v502_v33 = vmax.f32 %v475_v28, 0.0  ;;  %1402 = vmatmul.msk.bf16.gmra.mxu1 %vm244_vm1, %v1736_v36 }
  0xcf   :  { %v588_v40 = vmax.f32 %v558_v34, 0.0  ;;  %v420_v7 = vmax.f32 %v396_v46, 0.0 }
  0xd0   :  { %v518_v42 = vadd.f32 %v502_v33, %v434_v25  ;;  %v112_v33 = vld [vmem:[%s2251_s9 + $0x18] sm:$0xff] }
  0xd1   :  { %v1910_v44 = vadd.f32 %v588_v40, %v516_v26  ;;  %v97_v26 = vld [vmem:[%s2249_s7] sm:$0xff]  ;;  %1225 = vperm.xlu0 %1508, %v112_v33  }
  0xd2   :  { %1150 = vperm.xlu1 %1509, %v97_v26  }
  0xd3   :  { %v1916_v48 = vpop.f32.mrf.mxu2 }
  0xd4   :  { %v559_v49 = vpop.f32.mrf.mxu3  ;;  %v1918_v41 = vpop.f32.mrf.mxu1 }
  0xd5   :  { %v560_v60 = vadd.f32 %v559_v49, %v1809_v62  ;;  %v307_v6 = vpop.f32.mrf.mxu0  ;;  %v113_v49 = vld [vmem:[%s2252_s10] sm:$0xff] }
  0xd6   :  { %v308_v8 = vadd.f32 %v307_v6, %v1797_v56 }
  0xd7   :  { %v589_v16 = vmax.f32 %v560_v60, 0.0 }
  0xd8   :  { %v332_v17 = vmax.f32 %v308_v8, 0.0  ;;  %1393 = vmatmul.msk.bf16.gmra.mxu0 %vm244_vm1, %v1723_v35  ;;  %1411 = vmatmul.msk.bf16.gmra.mxu2 %vm244_vm1, %v1752_v38  ;;  %v99_v8 = vld [vmem:[%s2249_s7 + $0x10] sm:$0xff] }
  0xd9   :  { %v1929_v18 = vadd.f32 %v589_v16, %v517_v14  ;;  %1417 = vmatmul.msk.bf16.gmra.mxu3 %vm244_vm1, %v1723_v35  ;;  %1160 = vperm.xlu2 %1510, %v99_v8  }
  0xda   :  { %v436_v19 = vadd.f32 %v420_v7, %v332_v17  ;;  %1215 = vperm.xlu1 %1509, %v110_v29   ;;  %v115_v7 = vld [vmem:[%s2252_s10 + $0x10] sm:$0xff] }
  0xdb   :  { %v479_v4 = vpop.f32.mrf.mxu2  ;;  %1280 = vperm.xlu0 %1508, %v115_v7  }
  0xdc   :  { %v480_v21 = vadd.f32 %v479_v4, %v1797_v56  ;;  %v562_v22 = vpop.f32.mrf.mxu3  ;;  %v400_v25 = vpop.f32.mrf.mxu1 }
  0xdd   :  { %v563_v27 = vadd.f32 %v562_v22, %v1789_v55  ;;  %v1938_v28 = vpop.f32.mrf.mxu0  ;;  %v401_v40 = vadd.f32 %v400_v25, %v1779_v51 }
  0xde   :  { %v504_v35 = vmax.f32 %v480_v21, 0.0  ;;  %1403 = vmatmul.msk.bf16.gmra.mxu1 %vm244_vm1, %v1752_v38 }
  0xdf   :  { %v590_v32 = vmax.f32 %v563_v27, 0.0  ;;  %v422_v60 = vmax.f32 %v401_v40, 0.0 }
  0xe0   :  { %v520_v34 = vadd.f32 %v504_v35, %v436_v19  ;;  %v98_v35 = vld [vmem:[%s2249_s7 + $0x8] sm:$0xff] }
  0xe1   :  { %v1945_v30 = vadd.f32 %v590_v32, %v518_v42  ;;  %1155 = vperm.xlu2 %1510, %v98_v35  }
  0xe2   :  { %1270 = vperm.xlu1 %1509, %v113_v49   ;;  %v490_v49 = vadd.f32 %v1803_v59, %v1771_v50 }
  0xe3   :  { %v1954_v45 = vpop.f32.mrf.mxu2 }
  0xe4   :  { %2264 = vst [vmem:[#allocation9_spill] sm:$0xff] %v1954_v45  ;;  %v1956_v46 = vpop.f32.mrf.mxu3  ;;  %v1958_v47 = vpop.f32.mrf.mxu1  ;;  %v508_v7 = vmax.f32 %v490_v49, 0.0 }
  0xe5   :  { %v312_v42 = vpop.f32.mrf.mxu0 }
  0xe6   :  { %v313_v6 = vadd.f32 %v312_v42, %v1779_v51 }
  0xe8   :  { %v334_v26 = vmax.f32 %v313_v6, 0.0  ;;  %1394 = vmatmul.msk.bf16.gmra.mxu0 %vm244_vm1, %v1736_v36  ;;  %1412 = vmatmul.msk.bf16.gmra.mxu2 %vm244_vm1, %v1626_v10 }
  0xe9   :  { %1418 = vmatmul.msk.bf16.gmra.mxu3 %vm244_vm1, %v1736_v36  ;;  %v116_v36 = vld [vmem:[%s2252_s10 + $0x18] sm:$0xff] }
  0xea   :  { %v438_v14 = vadd.f32 %v422_v60, %v334_v26  ;;  %1285 = vperm.xlu1 %1509, %v116_v36   ;;  %v111_v26 = vld [vmem:[%s2251_s9 + $0x10] sm:$0xff]  ;;  %v492_v36 = vadd.f32 %v1815_v1, %v1783_v52 }
  0xeb   :  { %v484_v16 = vpop.f32.mrf.mxu2  ;;  %1220 = vperm.xlu2 %1510, %v111_v26  }
  0xec   :  { %v485_v17 = vadd.f32 %v484_v16, %v1779_v51  ;;  %v567_v20 = vpop.f32.mrf.mxu3  ;;  %v405_v19 = vpop.f32.mrf.mxu1  ;;  %v509_v49 = vmax.f32 %v492_v36, 0.0 }
  0xed   :  { %v568_v4 = vadd.f32 %v567_v20, %v1797_v56  ;;  %v1978_v21 = vpop.f32.mrf.mxu0  ;;  %v406_v32 = vadd.f32 %v405_v19, %v1771_v50  ;;  %v132_v36 = vpop.permute.xlu0 %131 }
  0xee   :  { %v506_v22 = vmax.f32 %v485_v17, 0.0  ;;  %1404 = vmatmul.msk.bf16.gmra.mxu1 %vm244_vm1, %v1626_v10 }
  0xef   :  { %v592_v25 = vmax.f32 %v568_v4, 0.0  ;;  %v424_v60 = vmax.f32 %v406_v32, 0.0  ;;  %v127_v32 = vpop.permute.xlu2 %126 }
  0xf0   :  { %v522_v27 = vadd.f32 %v506_v22, %v438_v14 }
  0xf1   :  { %v1985_v29 = vadd.f32 %v592_v25, %v520_v34 }
  0xf3   :  { %2265 = vst [vmem:[#allocation10_spill] sm:$0xff] %v1985_v29  ;;  %v1991_v33 = vpop.f32.mrf.mxu2 }
  0xf4   :  { %v1993_v39 = vpop.f32.mrf.mxu3  ;;  %v407_v40 = vpop.f32.mrf.mxu1 }
  0xf5   :  { %2266 = vst [vmem:[#allocation11_spill] sm:$0xff] %v1993_v39  ;;  %v317_v42 = vpop.f32.mrf.mxu0  ;;  %v408_v14 = vadd.f32 %v407_v40, %v1783_v52  ;;  %v114_v40 = vld [vmem:[%s2252_s10 + $0x8] sm:$0xff] }
  0xf6   :  { %v318_v34 = vadd.f32 %v317_v42, %v1771_v50  ;;  %1275 = vperm.xlu2 %1510, %v114_v40  }
  0xf8   :  { %v336_v6 = vmax.f32 %v318_v34, 0.0  ;;  %1395 = vmatmul.msk.bf16.gmra.mxu0 %vm244_vm1, %v1752_v38 }
  0xf9   :  { %1419 = vmatmul.msk.bf16.gmra.mxu3 %vm244_vm1, %v1752_v38  ;;  %v425_v38 = vmax.f32 %v408_v14, 0.0  ;;  %v455_v14 = vadd.f32 %v1799_v57, %v127_v32 }
  0xfa   :  { %v440_v8 = vadd.f32 %v424_v60, %v336_v6  ;;  %v283_v6 = vadd.f32 %v1787_v54, %v127_v32  ;;  %v117_v54 = vld [vmem:[#allocation2] sm:$0x1] }
  0xfb   :  { %v798_v59 = vpop.f32.mrf.mxu2 }
  0xfc   :  { %v572_v16 = vpop.f32.mrf.mxu3  ;;  %v714_v17 = vpop.f32.mrf.mxu1  ;;  %v524_v20 = vadd.f32 %v508_v7, %v440_v8 }
  0xfd   :  { %v573_v19 = vadd.f32 %v572_v16, %v1779_v51  ;;  %v319_v4 = vpop.f32.mrf.mxu0  ;;  %v322_v16 = vmax.f32 %v283_v6, 0.0 }
  0xfe   :  { %v320_v22 = vadd.f32 %v319_v4, %v1783_v52  ;;  %1303 = vperm.xlu2 %1510, %v117_v54  }
  0xff   :  { %v594_v25 = vmax.f32 %v573_v19, 0.0  ;;  %v543_v19 = vadd.f32 %v1832_v15, %v127_v32 }
 0x100   :  { %v337_v35 = vmax.f32 %v320_v22, 0.0 }
 0x101   :  { %v2010_v42 = vadd.f32 %v594_v25, %v522_v27 }
 0x102   :  { %v441_v60 = vadd.f32 %v425_v38, %v337_v35  ;;  %v494_v38 = vmax.f32 %v455_v14, 0.0  ;;  %v582_v35 = vmax.f32 %v543_v19, 0.0 }
 0x103   :  { %v2015_v34 = vpop.f32.mrf.mxu2 }
 0x104   :  { %v2018_v1 = vpop.f32.mrf.mxu3  ;;  %v716_v26 = vpop.f32.mrf.mxu1  ;;  %v525_v7 = vadd.f32 %v509_v49, %v441_v60  ;;  %v285_v49 = vadd.f32 %v1805_v61, %v132_v36 }
 0x105   :  { %v370_v8 = vpop.f32.mrf.mxu0 }
 0x106   :  { %v371_v27 = vadd.f32 %v370_v8, %v127_v32  ;;  %v323_v14 = vmax.f32 %v285_v49, 0.0 }
 0x108   :  { %v410_v4 = vmax.f32 %v371_v27, 0.0  ;;  %1396 = vmatmul.msk.bf16.gmra.mxu0 %vm244_vm1, %v1626_v10  ;;  %v457_v27 = vadd.f32 %v1811_v63, %v132_v36  ;;  %v799_v63 = vadd.f32 %v798_v59, %v127_v32  ;;  %v801_v59 = vadd.f32 %v2015_v34, %v132_v36 }
 0x109   :  { %1420 = vmatmul.msk.bf16.gmra.mxu3 %vm244_vm1, %v1626_v10  ;;  %v545_v10 = vadd.f32 %v1842_v31, %v132_v36 }
 0x10a   :  { %v426_v22 = vadd.f32 %v410_v4, %v322_v16  ;;  %v495_v54 = vmax.f32 %v457_v27, 0.0 }
 0x10b   :  { %v803_v25 = vpop.f32.mrf.mxu2 }
 0x10c   :  { %v510_v40 = vadd.f32 %v494_v38, %v426_v22  ;;  %v577_v57 = vpop.f32.mrf.mxu3  ;;  %v719_v60 = vpop.f32.mrf.mxu1  ;;  %v583_v38 = vmax.f32 %v545_v10, 0.0  ;;  %v715_v22 = vadd.f32 %v714_v17, %v127_v32 }
 0x10d   :  { %v578_v15 = vadd.f32 %v577_v57, %v1771_v50  ;;  %v372_v6 = vpop.f32.mrf.mxu0 }
 0x10e   :  { %v373_v8 = vadd.f32 %v372_v6, %v132_v36  ;;  %v598_v29 = vadd.f32 %v582_v35, %v510_v40  ;;  %v754_v31 = vmax.f32 %v715_v22, 0.0 }
 0x10f   :  { %v596_v56 = vmax.f32 %v578_v15, 0.0 }
 0x110   :  { %v411_v16 = vmax.f32 %v373_v8, 0.0 }
 0x111   :  { %v2030_v4 = vadd.f32 %v596_v56, %v524_v20  ;;  %v838_v56 = vmax.f32 %v799_v63, 0.0 }
 0x112   :  { %v427_v19 = vadd.f32 %v411_v16, %v323_v14 }
 0x113   :  { %2267 = vst [vmem:[#allocation12_spill] sm:$0xff] %v2030_v4  ;;  %v805_v50 = vpop.f32.mrf.mxu2 }
 0x114   :  { %v511_v61 = vadd.f32 %v495_v54, %v427_v19  ;;  %v579_v39 = vpop.f32.mrf.mxu3  ;;  %v721_v45 = vpop.f32.mrf.mxu1  ;;  %v717_v19 = vadd.f32 %v716_v26, %v132_v36 }
 0x115   :  { %v580_v57 = vadd.f32 %v579_v39, %v1783_v52  ;;  %v626_v6 = vpop.f32.mrf.mxu0 }
 0x116   :  { %v627_v35 = vadd.f32 %v626_v6, %v127_v32  ;;  %v599_v40 = vadd.f32 %v583_v38, %v511_v61  ;;  %v755_v22 = vmax.f32 %v717_v19, 0.0  ;;  %v720_v6 = vadd.f32 %v719_v60, %v1819_v5 }
 0x117   :  { %v597_v15 = vmax.f32 %v580_v57, 0.0 }
 0x118   :  { %v666_v49 = vmax.f32 %v627_v35, 0.0 }
 0x119   :  { %v2033_v8 = vadd.f32 %v597_v15, %v525_v7  ;;  %v839_v7 = vmax.f32 %v801_v59, 0.0  ;;  %v804_v15 = vadd.f32 %v803_v25, %v1819_v5 }
 0x11a   :  { %v682_v20 = vadd.f32 %v666_v49, %v598_v29 }
 0x11b   :  { %v808_v4 = vpop.f32.mrf.mxu2 }
 0x11c   :  { %v770_v27 = vadd.f32 %v754_v31, %v682_v20  ;;  %v886_v10 = vpop.f32.mrf.mxu3  ;;  %v724_v16 = vpop.f32.mrf.mxu1  ;;  %v756_v20 = vmax.f32 %v720_v6, 0.0 }
 0x11d   :  { %v887_v17 = vadd.f32 %v886_v10, %v127_v32  ;;  %v628_v14 = vpop.f32.mrf.mxu0  ;;  %v840_v10 = vmax.f32 %v804_v15, 0.0 }
 0x11e   :  { %v854_v54 = vadd.f32 %v838_v56, %v770_v27  ;;  %v629_v39 = vadd.f32 %v628_v14, %v132_v36 }
 0x11f   :  { %v926_v52 = vmax.f32 %v887_v17, 0.0 }
 0x120   :  { %v667_v38 = vmax.f32 %v629_v39, 0.0  ;;  %v722_v39 = vadd.f32 %v721_v45, %v1829_v13 }
 0x121   :  { %v942_v61 = vadd.f32 %v926_v52, %v854_v54 }
 0x122   :  { %v683_v57 = vadd.f32 %v667_v38, %v599_v40  ;;  %v757_v6 = vmax.f32 %v722_v39, 0.0 }
 0x123   :  { %v810_v52 = vpop.f32.mrf.mxu2  ;;  %v2040_v17 = vmul.f32 0.125, %v942_v61 }
 0x124   :  { %v771_v29 = vadd.f32 %v755_v22, %v683_v57  ;;  %v888_v63 = vpop.f32.mrf.mxu3  ;;  %v726_v56 = vpop.f32.mrf.mxu1 }
 0x125   :  { %v889_v35 = vadd.f32 %v888_v63, %v132_v36  ;;  %v631_v32 = vpop.f32.mrf.mxu0 }
 0x126   :  { %v855_v26 = vadd.f32 %v839_v7, %v771_v29  ;;  %v632_v31 = vadd.f32 %v631_v32, %v1819_v5 }
 0x127   :  { %v927_v49 = vmax.f32 %v889_v35, 0.0  ;;  %v725_v35 = vadd.f32 %v724_v16, %v1813_v0 }
 0x128   :  { %v668_v34 = vmax.f32 %v632_v31, 0.0  ;;  %v809_v31 = vadd.f32 %v808_v4, %v1813_v0 }
 0x129   :  { %v943_v27 = vadd.f32 %v927_v49, %v855_v26 }
 0x12a   :  { %v684_v40 = vadd.f32 %v668_v34, %v1859_v12  ;;  %v806_v12 = vadd.f32 %v805_v50, %v1829_v13  ;;  %v758_v34 = vmax.f32 %v725_v35, 0.0 }
 0x12b   :  { %v2042_v60 = vmul.f32 0.125, %v943_v27  ;;  %v813_v63 = vpop.f32.mrf.mxu2 }
 0x12c   :  { %v772_v36 = vadd.f32 %v756_v20, %v684_v40  ;;  %v891_v14 = vpop.f32.mrf.mxu3  ;;  %v729_v7 = vpop.f32.mrf.mxu1  ;;  %v842_v40 = vmax.f32 %v809_v31, 0.0  ;;  %v814_v31 = vadd.f32 %v813_v63, %v1838_v23 }
 0x12d   :  { %v892_v25 = vadd.f32 %v891_v14, %v1819_v5  ;;  %v633_v19 = vpop.f32.mrf.mxu0  ;;  %v974_v54 = vpack.c.bf16 %v2042_v60, %v2040_v17  ;;  %v841_v5 = vmax.f32 %v806_v12, 0.0  ;;  %v1497_v17 = vld [vmem:[%s2248_s6] sm:$0xff] }
 0x12e   :  { %v856_v59 = vadd.f32 %v840_v10, %v772_v36  ;;  %v634_v38 = vadd.f32 %v633_v19, %v1829_v13 }
 0x12f   :  { %v928_v22 = vmax.f32 %v892_v25, 0.0 }
 0x130   :  { %v669_v61 = vmax.f32 %v634_v38, 0.0  ;;  %v727_v38 = vadd.f32 %v726_v56, %v1849_v43 }
 0x131   :  { %v944_v57 = vadd.f32 %v928_v22, %v856_v59 }
 0x132   :  { %v685_v29 = vadd.f32 %v669_v61, %v1869_v24  ;;  %v811_v61 = vadd.f32 %v810_v52, %v1849_v43 }
 0x133   :  { %v2056_v36 = vmul.f32 0.125, %v944_v57  ;;  %v815_v19 = vpop.f32.mrf.mxu2 }
 0x134   :  { %v773_v32 = vadd.f32 %v757_v6, %v685_v29  ;;  %v893_v15 = vpop.f32.mrf.mxu3  ;;  %v731_v14 = vpop.f32.mrf.mxu1  ;;  %v759_v29 = vmax.f32 %v727_v38, 0.0  ;;  %v843_v35 = vmax.f32 %v811_v61, 0.0 }
 0x135   :  { %v894_v45 = vadd.f32 %v893_v15, %v1829_v13  ;;  %v636_v26 = vpop.f32.mrf.mxu0 }
 0x136   :  { %v857_v49 = vadd.f32 %v841_v5, %v773_v32  ;;  %v637_v50 = vadd.f32 %v636_v26, %v1813_v0 }
 0x137   :  { %v929_v20 = vmax.f32 %v894_v45, 0.0 }
 0x138   :  { %v670_v27 = vmax.f32 %v637_v50, 0.0 }
 0x139   :  { %v945_v10 = vadd.f32 %v929_v20, %v857_v49 }
 0x13a   :  { %v686_v24 = vadd.f32 %v670_v27, %v1879_v2 }
 0x13b   :  { %v2058_v16 = vmul.f32 0.125, %v945_v10  ;;  %v818_v52 = vpop.f32.mrf.mxu2 }
 0x13c   :  { %v774_v25 = vadd.f32 %v758_v34, %v686_v24  ;;  %v896_v13 = vpop.f32.mrf.mxu3  ;;  %v734_v45 = vpop.f32.mrf.mxu1 }
 0x13d   :  { %v897_v4 = vadd.f32 %v896_v13, %v1813_v0  ;;  %v638_v39 = vpop.f32.mrf.mxu0  ;;  %v975_v59 = vpack.c.bf16 %v2058_v16, %v2056_v36  ;;  %v730_v0 = vadd.f32 %v729_v7, %v1838_v23  ;;  %v1503_v36 = vld [vmem:[%s2243_s1] sm:$0x70] }
 0x13e   :  { %v858_v22 = vadd.f32 %v842_v40, %v774_v25  ;;  %v639_v12 = vadd.f32 %v638_v39, %v1849_v43  ;;  %v732_v39 = vadd.f32 %v731_v14, %v1809_v62 }
 0x13f   :  { %v930_v2 = vmax.f32 %v897_v4, 0.0  ;;  %v760_v34 = vmax.f32 %v730_v0, 0.0  ;;  %v735_v0 = vadd.f32 %v734_v45, %v1789_v55 }
 0x140   :  { %v671_v57 = vmax.f32 %v639_v12, 0.0 }
 0x141   :  { %v946_v6 = vadd.f32 %v930_v2, %v858_v22  ;;  %v762_v45 = vmax.f32 %v735_v0, 0.0 }
 0x142   :  { %v687_v5 = vadd.f32 %v671_v57, %v1893_v9  ;;  %v844_v9 = vmax.f32 %v814_v31, 0.0  ;;  %v819_v31 = vadd.f32 %v818_v52, %v1789_v55 }
 0x143   :  { %v2072_v7 = vmul.f32 0.125, %v946_v6  ;;  %v820_v57 = vpop.f32.mrf.mxu2 }
 0x144   :  { %v775_v32 = vadd.f32 %v759_v29, %v687_v5  ;;  %v898_v15 = vpop.f32.mrf.mxu3  ;;  %v736_v12 = vpop.f32.mrf.mxu1  ;;  %v761_v29 = vmax.f32 %v732_v39, 0.0 }
 0x145   :  { %v899_v26 = vadd.f32 %v898_v15, %v1849_v43  ;;  %v641_v56 = vpop.f32.mrf.mxu0 }
 0x146   :  { %v859_v49 = vadd.f32 %v843_v35, %v775_v32  ;;  %v642_v50 = vadd.f32 %v641_v56, %v1838_v23  ;;  %v305_v35 = vadd.f32 %v1902_v37, %v1801_v58  ;;  %v477_v56 = vadd.f32 %v1916_v48, %v1801_v58 }
 0x147   :  { %v931_v20 = vmax.f32 %v899_v26, 0.0  ;;  %v565_v37 = vadd.f32 %v1956_v46, %v1801_v58 }
 0x148   :  { %v672_v27 = vmax.f32 %v642_v50, 0.0 }
 0x149   :  { %v947_v10 = vadd.f32 %v931_v20, %v859_v49  ;;  %v331_v20 = vmax.f32 %v305_v35, 0.0 }
 0x14a   :  { %v688_v40 = vadd.f32 %v672_v27, %v1910_v44  ;;  %v816_v44 = vadd.f32 %v815_v19, %v1809_v62 }
 0x14b   :  { %v2074_v24 = vmul.f32 0.125, %v947_v10  ;;  %v503_v10 = vmax.f32 %v477_v56, 0.0  ;;  %v2100_v52 = vpop.f32.mrf.mxu2 }
 0x14c   :  { %v776_v25 = vadd.f32 %v760_v34, %v688_v40  ;;  %v901_v43 = vpop.f32.mrf.mxu3  ;;  %v845_v14 = vmax.f32 %v816_v44, 0.0  ;;  %v2095_v27 = vpop.f32.mrf.mxu1  ;;  %v737_v44 = vadd.f32 %v736_v12, %v1801_v58 }
 0x14d   :  { %v902_v13 = vadd.f32 %v901_v43, %v1838_v23  ;;  %v643_v63 = vpop.f32.mrf.mxu0  ;;  %v976_v4 = vpack.c.bf16 %v2074_v24, %v2072_v7  ;;  %v393_v23 = vadd.f32 %v1882_v11, %v1801_v58  ;;  %v1447_v7 = vld [vmem:[%s2243_s1] sm:$0xf]  ;;  %v1498_v24 = vld [vmem:[%s2248_s6 + $0x8] sm:$0xff] }
 0x14e   :  { %v860_v38 = vadd.f32 %v844_v9, %v776_v25  ;;  %v644_v22 = vadd.f32 %v643_v63, %v1809_v62  ;;  %v846_v9 = vmax.f32 %v819_v31, 0.0  ;;  %v1448_v16 = vor.u32 %v1503_v36, %v1447_v7 }
 0x14f   :  { %v932_v2 = vmax.f32 %v902_v13, 0.0  ;;  %v419_v11 = vmax.f32 %v393_v23, 0.0  ;;  %v591_v13 = vmax.f32 %v565_v37, 0.0 }
 0x150   :  { %v673_v61 = vmax.f32 %v644_v22, 0.0 }
 0x151   :  { %v948_v6 = vadd.f32 %v932_v2, %v860_v38  ;;  %v435_v43 = vadd.f32 %v419_v11, %v331_v20 }
 0x152   :  { %v689_v5 = vadd.f32 %v673_v61, %v1929_v18 }
 0x153   :  { %v2098_v40 = vmul.f32 0.125, %v948_v6  ;;  %v519_v2 = vadd.f32 %v503_v10, %v435_v43 }
 0x154   :  { %v777_v32 = vadd.f32 %v761_v29, %v689_v5  ;;  %v903_v15 = vpop.f32.mrf.mxu3  ;;  %v821_v5 = vadd.f32 %v820_v57, %v1801_v58 }
 0x155   :  { %v904_v26 = vadd.f32 %v903_v15, %v1809_v62  ;;  %v646_v19 = vpop.f32.mrf.mxu0  ;;  %v607_v29 = vadd.f32 %v591_v13, %v519_v2 }
 0x156   :  { %v861_v18 = vadd.f32 %v845_v14, %v777_v32  ;;  %v647_v49 = vadd.f32 %v646_v19, %v1789_v55  ;;  %v763_v14 = vmax.f32 %v737_v44, 0.0  ;;  %v2110_v32 = vpop.f32.mrf.mxu1  ;;  %v2112_v19 = vpop.f32.mrf.mxu2 }
 0x157   :  { %v933_v50 = vmax.f32 %v904_v26, 0.0 }
 0x158   :  { %v674_v34 = vmax.f32 %v647_v49, 0.0 }
 0x159   :  { %v949_v62 = vadd.f32 %v933_v50, %v861_v18 }
 0x15a   :  { %v690_v48 = vadd.f32 %v674_v34, %v1945_v30 }
 0x15b   :  { %v2102_v25 = vmul.f32 0.125, %v949_v62  ;;  %v315_v62 = vadd.f32 %v1978_v21, %v1785_v53 }
 0x15c   :  { %v778_v63 = vadd.f32 %v762_v45, %v690_v48  ;;  %v906_v39 = vpop.f32.mrf.mxu3  ;;  %v487_v48 = vadd.f32 %v1991_v33, %v1785_v53 }
 0x15d   :  { %v907_v46 = vadd.f32 %v906_v39, %v1789_v55  ;;  %v648_v38 = vpop.f32.mrf.mxu0  ;;  %v977_v22 = vpack.c.bf16 %v2102_v25, %v2098_v40  ;;  %v847_v55 = vmax.f32 %v821_v5, 0.0  ;;  %v1492_v40 = vld [vmem:[%s2246_s4 + $0x8] sm:$0xff] }
 0x15e   :  { %v862_v30 = vadd.f32 %v846_v9, %v778_v63  ;;  %v649_v61 = vadd.f32 %v648_v38, %v1801_v58  ;;  %v744_v20 = vpop.f32.mrf.mxu1  ;;  %v828_v34 = vpop.f32.mrf.mxu2  ;;  %v575_v38 = vadd.f32 %v2018_v1, %v1785_v53  ;;  %v507_v44 = vmax.f32 %v487_v48, 0.0 }
 0x15f   :  { %v934_v6 = vmax.f32 %v907_v46, 0.0  ;;  %v745_v13 = vadd.f32 %v744_v20, %v1779_v51  ;;  %v335_v46 = vmax.f32 %v315_v62, 0.0 }
 0x160   :  { %v675_v23 = vmax.f32 %v649_v61, 0.0  ;;  %v595_v33 = vmax.f32 %v575_v38, 0.0  ;;  %v2269_v38 = vld [vmem:[#allocation11_spill] sm:$0xff] }
 0x161   :  { %v950_v35 = vadd.f32 %v934_v6, %v862_v30  ;;  %v766_v21 = vmax.f32 %v745_v13, 0.0  ;;  %v829_v30 = vadd.f32 %v828_v34, %v1779_v51 }
 0x162   :  { %v691_v0 = vadd.f32 %v675_v23, %v607_v29 }
 0x163   :  { %v2117_v11 = vmul.f32 0.125, %v950_v35 }
 0x164   :  { %v779_v15 = vadd.f32 %v763_v14, %v691_v0  ;;  %v908_v26 = vpop.f32.mrf.mxu3  ;;  %v850_v0 = vmax.f32 %v829_v30, 0.0 }
 0x165   :  { %v909_v12 = vadd.f32 %v908_v26, %v1801_v58  ;;  %v2115_v56 = vpop.f32.mrf.mxu0  ;;  %v403_v58 = vadd.f32 %v1958_v47, %v1785_v53 }
 0x166   :  { %v863_v31 = vadd.f32 %v847_v55, %v779_v15  ;;  %v746_v63 = vpop.f32.mrf.mxu1  ;;  %v830_v2 = vpop.f32.mrf.mxu2 }
 0x167   :  { %v935_v18 = vmax.f32 %v909_v12, 0.0  ;;  %v423_v39 = vmax.f32 %v403_v58, 0.0  ;;  %v747_v35 = vadd.f32 %v746_v63, %v1785_v53  ;;  %v831_v26 = vadd.f32 %v830_v2, %v1785_v53  ;;  %v2270_v2 = vld [vmem:[#allocation6_spill] sm:$0xff] }
 0x169   :  { %v951_v49 = vadd.f32 %v935_v18, %v863_v31  ;;  %v439_v6 = vadd.f32 %v423_v39, %v335_v46  ;;  %v310_v18 = vadd.f32 %v1938_v28, %v1817_v3 }
 0x16b   :  { %v2119_v57 = vmul.f32 0.125, %v951_v49  ;;  %v523_v23 = vadd.f32 %v507_v44, %v439_v6  ;;  %v767_v49 = vmax.f32 %v747_v35, 0.0 }
 0x16c   :  { %v2121_v50 = vpop.f32.mrf.mxu3 }
 0x16d   :  { %v653_v37 = vpop.f32.mrf.mxu0  ;;  %v978_v45 = vpack.c.bf16 %v2119_v57, %v2117_v11  ;;  %v611_v15 = vadd.f32 %v595_v33, %v523_v23  ;;  %v1493_v57 = vld [vmem:[%s2247_s5] sm:$0xff] }
 0x16e   :  { %v749_v31 = vpop.f32.mrf.mxu1  ;;  %v833_v34 = vpop.f32.mrf.mxu2  ;;  %v654_v33 = vadd.f32 %v653_v37, %v1817_v3 }
 0x174   :  { %v2129_v10 = vpop.f32.mrf.mxu3 }
 0x175   :  { %v656_v9 = vpop.f32.mrf.mxu0 }
 0x176   :  { %v657_v43 = vadd.f32 %v656_v9, %v1779_v51  ;;  %v2268_v9 = vld [vmem:[#allocation9_spill] sm:$0xff]  ;;  %v835_v37 = vpop.f32.mrf.mxu2 }
 0x177   :  { %v482_v48 = vadd.f32 %v2268_v9, %v1817_v3 }
 0x178   :  { %v678_v47 = vmax.f32 %v657_v43, 0.0 }
 0x17a   :  { %v694_v61 = vadd.f32 %v678_v47, %v2010_v42  ;;  %v398_v42 = vadd.f32 %v1918_v41, %v1817_v3  ;;  %v333_v41 = vmax.f32 %v310_v18, 0.0  ;;  %v570_v47 = vadd.f32 %v2269_v38, %v1817_v3 }
 0x17b   :  { %v677_v18 = vmax.f32 %v654_v33, 0.0 }
 0x17c   :  { %v916_v29 = vpop.f32.mrf.mxu3  ;;  %v782_v55 = vadd.f32 %v766_v21, %v694_v61  ;;  %v421_v63 = vmax.f32 %v398_v42, 0.0  ;;  %v505_v61 = vmax.f32 %v482_v48, 0.0  ;;  %v593_v35 = vmax.f32 %v570_v47, 0.0  ;;  %v2273_v48 = vld [vmem:[#allocation7_spill] sm:$0xff] }
 0x17d   :  { %v658_v5 = vpop.f32.mrf.mxu0  ;;  %v917_v1 = vadd.f32 %v916_v29, %v1779_v51  ;;  %v851_v51 = vmax.f32 %v831_v26, 0.0  ;;  %v750_v29 = vadd.f32 %v749_v31, %v2270_v2 }
 0x17e   :  { %v659_v14 = vadd.f32 %v658_v5, %v1785_v53  ;;  %v866_v58 = vadd.f32 %v850_v0, %v782_v55  ;;  %v437_v23 = vadd.f32 %v421_v63, %v333_v41  ;;  %v751_v0 = vpop.f32.mrf.mxu1 }
 0x17f   :  { %v938_v62 = vmax.f32 %v917_v1, 0.0 }
 0x180   :  { %v679_v12 = vmax.f32 %v659_v14, 0.0 }
 0x181   :  { %v954_v21 = vadd.f32 %v938_v62, %v866_v58 }
 0x182   :  { %v695_v20 = vadd.f32 %v679_v12, %v611_v15  ;;  %v2272_v15 = vld [vmem:[#allocation12_spill] sm:$0xff]  ;;  %v521_v12 = vadd.f32 %v505_v61, %v437_v23 }
 0x183   :  { %v970_v55 = vmul.f32 0.125, %v954_v21 }
 0x184   :  { %v783_v43 = vadd.f32 %v767_v49, %v695_v20  ;;  %v918_v13 = vpop.f32.mrf.mxu3  ;;  %v768_v49 = vmax.f32 %v750_v29, 0.0  ;;  %v834_v20 = vadd.f32 %v833_v34, %v2270_v2  ;;  %v609_v62 = vadd.f32 %v593_v35, %v521_v12 }
 0x185   :  { %v919_v39 = vadd.f32 %v918_v13, %v1785_v53  ;;  %v661_v46 = vpop.f32.mrf.mxu0  ;;  %v2271_v53 = vld [vmem:[#allocation8_spill] sm:$0xff]  ;;  %v836_v34 = vadd.f32 %v835_v37, %v2273_v48 }
 0x186   :  { %v867_v28 = vadd.f32 %v851_v51, %v783_v43  ;;  %v662_v44 = vadd.f32 %v661_v46, %v2270_v2  ;;  %v652_v14 = vadd.f32 %v2115_v56, %v2271_v53  ;;  %v740_v9 = vadd.f32 %v2095_v27, %v2271_v53 }
 0x187   :  { %v939_v30 = vmax.f32 %v919_v39, 0.0  ;;  %v752_v56 = vadd.f32 %v751_v0, %v2273_v48  ;;  %v742_v43 = vadd.f32 %v2110_v32, %v1817_v3  ;;  %v824_v41 = vadd.f32 %v2100_v52, %v2271_v53 }
 0x188   :  { %v680_v6 = vmax.f32 %v662_v44, 0.0  ;;  %v676_v13 = vmax.f32 %v652_v14, 0.0  ;;  %v693_v38 = vadd.f32 %v677_v18, %v609_v62  ;;  %v852_v47 = vmax.f32 %v834_v20, 0.0 }
 0x189   :  { %v955_v5 = vadd.f32 %v939_v30, %v867_v28  ;;  %v764_v27 = vmax.f32 %v740_v9, 0.0  ;;  %v826_v28 = vadd.f32 %v2112_v19, %v1817_v3  ;;  %v769_v44 = vmax.f32 %v752_v56, 0.0  ;;  %v2274_v30 = vld [vmem:[#allocation10_spill] sm:$0xff]  ;;  %v1495_v56 = vld [vmem:[%s2247_s5 + $0x10] sm:$0xff] }
 0x18a   :  { %v696_v26 = vadd.f32 %v680_v6, %v2272_v15  ;;  %v765_v32 = vmax.f32 %v742_v43, 0.0  ;;  %v692_v61 = vadd.f32 %v676_v13, %v2274_v30  ;;  %v853_v33 = vmax.f32 %v836_v34, 0.0 }
 0x18b   :  { %v971_v1 = vmul.f32 0.125, %v955_v5  ;;  %v914_v52 = vadd.f32 %v2129_v10, %v1817_v3  ;;  %v848_v14 = vmax.f32 %v824_v41, 0.0  ;;  %v849_v0 = vmax.f32 %v826_v28, 0.0 }
 0x18c   :  { %v921_v42 = vpop.f32.mrf.mxu3  ;;  %v784_v63 = vadd.f32 %v768_v49, %v696_v26  ;;  %v781_v23 = vadd.f32 %v765_v32, %v693_v38  ;;  %v1186_v32 = vpop.permute.xlu2 %1185 }
 0x18d   :  { %v663_v58 = vpop.f32.mrf.mxu0  ;;  %v980_v31 = vpack.c.bf16 %v971_v1, %v970_v55  ;;  %v922_v39 = vadd.f32 %v921_v42, %v2270_v2  ;;  %v780_v55 = vadd.f32 %v764_v27, %v692_v61  ;;  %v937_v12 = vmax.f32 %v914_v52, 0.0  ;;  %v1181_v61 = vpop.permute.xlu1 %1180 }
 0x18e   :  { %v664_v51 = vadd.f32 %v663_v58, %v2273_v48  ;;  %v868_v6 = vadd.f32 %v852_v47, %v784_v63  ;;  %v865_v26 = vadd.f32 %v849_v0, %v781_v23 }
 0x18f   :  { %v940_v2 = vmax.f32 %v922_v39, 0.0  ;;  %v864_v18 = vadd.f32 %v848_v14, %v780_v55 }
 0x190   :  { %v681_v46 = vmax.f32 %v664_v51, 0.0  ;;  %v953_v58 = vadd.f32 %v937_v12, %v865_v26  ;;  %v1496_v51 = vld [vmem:[%s2247_s5 + $0x18] sm:$0xff] }
 0x191   :  { %v956_v1 = vadd.f32 %v940_v2, %v868_v6  ;;  %v1171_v2 = vpop.permute.xlu0 %1170 }
 0x192   :  { %v697_v21 = vadd.f32 %v681_v46, %v2033_v8  ;;  %v912_v8 = vadd.f32 %v2121_v50, %v2271_v53  ;;  %v969_v62 = vmul.f32 0.125, %v953_v58  ;;  %v1491_v50 = vld [vmem:[%s2246_s4] sm:$0xff]  ;;  %v1494_v53 = vld [vmem:[%s2247_s5 + $0x8] sm:$0xff] }
 0x193   :  { %v972_v20 = vmul.f32 0.125, %v956_v1 }
 0x194   :  { %v785_v29 = vadd.f32 %v769_v44, %v697_v21  ;;  %v923_v5 = vpop.f32.mrf.mxu3  ;;  %v936_v49 = vmax.f32 %v912_v8, 0.0 }
 0x195   :  { %v924_v35 = vadd.f32 %v923_v5, %v2273_v48 }
 0x196   :  { %v869_v19 = vadd.f32 %v853_v33, %v785_v29  ;;  %v952_v10 = vadd.f32 %v936_v49, %v864_v18  ;;  %v1161_v29 = vpop.permute.xlu2 %1160 }
 0x197   :  { %v941_v15 = vmax.f32 %v924_v35, 0.0 }
 0x198   :  { %v968_v9 = vmul.f32 0.125, %v952_v10 }
 0x199   :  { %v957_v42 = vadd.f32 %v941_v15, %v869_v19  ;;  %v1176_v19 = vpop.permute.xlu1 %1175  ;;  %v1166_v18 = vpop.permute.xlu0 %1165 }
 0x19a   :  { %v979_v48 = vpack.c.bf16 %v969_v62, %v968_v9 }
 0x19b   :  { %v973_v37 = vmul.f32 0.125, %v957_v42 }
 0x19d   :  { %v981_v3 = vpack.c.bf16 %v973_v37, %v972_v20 }
 0x19e   :  { %v1156_v62 = vpop.permute.xlu2 %1155 }
 0x19f   :  { %994 = vmatpush.bf16.msrb.mxu0 %v981_v3 }
 0x1a3   :  { %995 = vmatpush.bf16.msrb.mxu0 %v980_v31  ;;  %v1500_v31 = vld [vmem:[%s2248_s6 + $0x18] sm:$0xff] }
 0x1a7   :  { %996 = vmatpush.bf16.msrb.mxu0 %v979_v48 }
 0x1ab   :  { %997 = vmatpush.bf16.msrb.mxu0 %v978_v45  ;;  %v1499_v45 = vld [vmem:[%s2248_s6 + $0x10] sm:$0xff] }
 0x1af   :  { %998 = vmatpush.bf16.msrb.mxu0 %v977_v22 }
 0x1b3   :  { %999 = vmatpush.bf16.msrb.mxu0 %v976_v4 }
 0x1b7   :  { %1000 = vmatpush.bf16.msrb.mxu0 %v975_v59  ;;  %v1055_v59 = vsel %vm1053_vm2, %v1448_v16, 0 }
 0x1b8   :  { %1064 = vmatpush.bf16.msra.mxu1 %v1055_v59 }
 0x1bb   :  { %1001 = vmatpush.bf16.msrb.mxu0 %v974_v54  ;;  %1449 = vmatmul.msk.bf16.vlgmr.msra.gmra.mxu1 %vm1040_vm3, %v1497_v17 }
 0x1be   :  { %1002 = vmatmul.bf16.vlgmr.msrb.gmra.mxu0 %v1491_v50 }
 0x1cb   :  { %1450 = vmatmul.msk.bf16.gmra.mxu1 %vm1040_vm3, %v1498_v24  ;;  %v1502_v24 = vld [vmem:[%s2250_s8 + $0x8] sm:$0xff] }
 0x1ce   :  { %1007 = vmatmul.bf16.gmra.mxu0 %v1492_v40  ;;  %v1151_v40 = vpop.permute.xlu1 %1150 }
 0x1db   :  { %1451 = vmatmul.msk.bf16.gmra.mxu1 %vm1040_vm3, %v1499_v45 }
 0x1eb   :  { %1452 = vmatmul.msk.bf16.gmra.mxu1 %vm1040_vm3, %v1500_v31 }
 0x238   :  { %v1066_v43 = vpop.f32.mrf.mxu1 }
 0x23b   :  { %v1003_v60 = vpop.f32.mrf.mxu0 }
 0x240   :  { %v1068_v13 = vpop.f32.mrf.mxu1 }
 0x243   :  { %v1005_v54 = vpop.f32.mrf.mxu0 }
 0x244   :  { %v1013_v11 = vpack.c.bf16 %v1005_v54, %v1003_v60  ;;  %v1501_v54 = vld [vmem:[%s2250_s8] sm:$0xff]  ;;  %s1538_s8 = smov [#allocation3]  }
 0x245   :  { %s1314_s26 = sshll.u32 %s1538_s8, 4  ;;  %s1315_s26 = int_to_ptr.vmem [resolvable:$true] %s1314_s26 }
 0x248   :  { %v1071_v34 = vpop.f32.mrf.mxu1 }
 0x24b   :  { %v1008_v4 = vpop.f32.mrf.mxu0 }
 0x250   :  { %v1073_v38 = vpop.f32.mrf.mxu1 }
 0x253   :  { %v1010_v25 = vpop.f32.mrf.mxu0 }
 0x254   :  { %v1014_v22 = vpack.c.bf16 %v1010_v25, %v1008_v4  ;;  %v1211_v25 = vpop.permute.xlu0 %1210 }
 0x256   :  { %1125 = vmatpush.bf16.msra.mxu2 %v1014_v22  ;;  %v1216_v22 = vpop.permute.xlu1 %1215 }
 0x258   :  { %v1076_v27 = vpop.f32.mrf.mxu1 }
 0x25a   :  { %1126 = vmatpush.bf16.msra.mxu2 %v1013_v11 }
 0x25c   :  { %v1226_v45 = vpop.permute.xlu0 %1225 }
 0x25d   :  { %1469 = vmatmul.msk.bf16.vlgmr.msra.gmra.mxu2 %vm1106_vm4, %v1493_v57  ;;  %v1221_v57 = vpop.permute.xlu2 %1220 }
 0x260   :  { %v1078_v44 = vpop.f32.mrf.mxu1 }
 0x268   :  { %v1081_v30 = vpop.f32.mrf.mxu1 }
 0x26d   :  { %1470 = vmatmul.msk.bf16.gmra.mxu2 %vm1106_vm4, %v1494_v53 }
 0x270   :  { %v1083_v23 = vpop.f32.mrf.mxu1 }
 0x27d   :  { %1471 = vmatmul.msk.bf16.gmra.mxu2 %vm1106_vm4, %v1495_v56 }
 0x28d   :  { %1472 = vmatmul.msk.bf16.gmra.mxu2 %vm1106_vm4, %v1496_v51 }
 0x2e0   :  { %v1128_v63 = vpop.f32.mrf.mxu2 }
 0x2e1   :  { %v1129_v39 = vadd.f32 %v1128_v63, %v1066_v43  ;;  %v1271_v43 = vpop.permute.xlu1 %1270 }
 0x2e3   :  { %v1188_v7 = vadd.f32 %v1151_v40, %v1129_v39 }
 0x2e5   :  { %v1196_v17 = vmax.f32 %v1188_v7, 0.0 }
 0x2e8   :  { %v1130_v46 = vpop.f32.mrf.mxu2 }
 0x2e9   :  { %v1131_v49 = vadd.f32 %v1130_v46, %v1068_v13 }
 0x2eb   :  { %v1189_v9 = vadd.f32 %v1156_v62, %v1131_v49 }
 0x2ed   :  { %v1197_v16 = vmax.f32 %v1189_v9, 0.0 }
 0x2ef   :  { %v1204_v60 = vpack.c.bf16 %v1197_v16, %v1196_v17 }
 0x2f0   :  { %v1133_v41 = vpop.f32.mrf.mxu2 }
 0x2f1   :  { %v1134_v15 = vadd.f32 %v1133_v41, %v1071_v34  ;;  %v1276_v34 = vpop.permute.xlu2 %1275  ;;  %v1281_v41 = vpop.permute.xlu0 %1280 }
 0x2f3   :  { %v1190_v3 = vadd.f32 %v1161_v29, %v1134_v15 }
 0x2f5   :  { %v1198_v36 = vmax.f32 %v1190_v3, 0.0 }
 0x2f8   :  { %v1135_v47 = vpop.f32.mrf.mxu2 }
 0x2f9   :  { %v1136_v55 = vadd.f32 %v1135_v47, %v1073_v38 }
 0x2fb   :  { %v1191_v20 = vadd.f32 %v1166_v18, %v1136_v55 }
 0x2fd   :  { %v1199_v48 = vmax.f32 %v1191_v20, 0.0 }
 0x2ff   :  { %v1205_v59 = vpack.c.bf16 %v1199_v48, %v1198_v36 }
 0x300   :  { %v1138_v28 = vpop.f32.mrf.mxu2 }
 0x301   :  { %v1139_v35 = vadd.f32 %v1138_v28, %v1076_v27 }
 0x303   :  { %v1192_v26 = vadd.f32 %v1171_v2, %v1139_v35 }
 0x305   :  { %v1200_v10 = vmax.f32 %v1192_v26, 0.0 }
 0x308   :  { %v1140_v21 = vpop.f32.mrf.mxu2 }
 0x309   :  { %v1141_v5 = vadd.f32 %v1140_v21, %v1078_v44 }
 0x30b   :  { %v1193_v8 = vadd.f32 %v1176_v19, %v1141_v5 }
 0x30d   :  { %v1201_v37 = vmax.f32 %v1193_v8, 0.0 }
 0x30f   :  { %v1206_v50 = vpack.c.bf16 %v1201_v37, %v1200_v10 }
 0x310   :  { %v1143_v6 = vpop.f32.mrf.mxu2 }
 0x311   :  { %v1144_v33 = vadd.f32 %v1143_v6, %v1081_v30 }
 0x313   :  { %v1194_v14 = vadd.f32 %v1181_v61, %v1144_v33 }
 0x315   :  { %v1202_v12 = vmax.f32 %v1194_v14, 0.0 }
 0x318   :  { %v1145_v52 = vpop.f32.mrf.mxu2 }
 0x319   :  { %v1146_v0 = vadd.f32 %v1145_v52, %v1083_v23  ;;  %v1304_v23 = vpop.permute.xlu2 %1303 }
 0x31a   :  { %v1306_v35 = vperm.slane %v1304_v23, 0 }
 0x31b   :  { %v1195_v1 = vadd.f32 %v1186_v32, %v1146_v0  ;;  %v1286_v32 = vpop.permute.xlu1 %1285 }
 0x31d   :  { %v1203_v42 = vmax.f32 %v1195_v1, 0.0 }
 0x31f   :  { %v1207_v58 = vpack.c.bf16 %v1203_v42, %v1202_v12 }
 0x321   :  { %1249 = vmatpush.bf16.msrb.mxu3 %v1207_v58 }
 0x325   :  { %1250 = vmatpush.bf16.msrb.mxu3 %v1206_v50 }
 0x329   :  { %1251 = vmatpush.bf16.msrb.mxu3 %v1205_v59 }
 0x32d   :  { %1252 = vmatpush.bf16.msrb.mxu3 %v1204_v60 }
 0x330   :  { %1481 = vmatmul.msk.bf16.vlgmr.msrb.gmra.mxu3 %vm1238_vm5, %v1501_v54 }
 0x340   :  { %1482 = vmatmul.msk.bf16.gmra.mxu3 %vm1238_vm5, %v1502_v24 }
 0x3b3   :  { %v1254_v4 = vpop.f32.mrf.mxu3 }
 0x3b4   :  { %v1255_v56 = vadd.f32 %v1254_v4, %v1211_v25 }
 0x3b6   :  { %v1264_v63 = vmax.f32 %v1255_v56, 0.0 }
 0x3b8   :  { %v1288_v47 = vmul.f32 %v1271_v43, %v1264_v63 }
 0x3bb   :  { %v1256_v11 = vpop.f32.mrf.mxu3 }
 0x3bc   :  { %v1257_v53 = vadd.f32 %v1256_v11, %v1216_v22 }
 0x3be   :  { %v1265_v13 = vmax.f32 %v1257_v53, 0.0 }
 0x3c0   :  { %v1289_v46 = vmul.f32 %v1276_v34, %v1265_v13 }
 0x3c2   :  { %v1292_v44 = vadd.f32 %v1289_v46, %v1288_v47 }
 0x3c3   :  { %v1259_v31 = vpop.f32.mrf.mxu3 }
 0x3c4   :  { %v1260_v51 = vadd.f32 %v1259_v31, %v1221_v57 }
 0x3c6   :  { %v1266_v39 = vmax.f32 %v1260_v51, 0.0 }
 0x3c8   :  { %v1290_v27 = vmul.f32 %v1281_v41, %v1266_v39 }
 0x3ca   :  { %v1293_v30 = vadd.f32 %v1292_v44, %v1290_v27 }
 0x3cb   :  { %v1261_v38 = vpop.f32.mrf.mxu3 }
 0x3cc   :  { %v1262_v28 = vadd.f32 %v1261_v38, %v1226_v45 }
 0x3ce   :  { %v1267_v21 = vmax.f32 %v1262_v28, 0.0 }
 0x3d0   :  { %v1291_v61 = vmul.f32 %v1286_v32, %v1267_v21 }
 0x3d2   :  { %v1294_v6 = vadd.f32 %v1293_v30, %v1291_v61 }
 0x3d4   :  { %v1295_v2 = vrot.slane %v1294_v6, 4 }
 0x3d6   :  { %v1296_v33 = vadd.f32 %v1295_v2, %v1294_v6 }
 0x3d8   :  { %v1297_v29 = vrot.slane %v1296_v33, 2 }
 0x3da   :  { %v1298_v5 = vadd.f32 %v1297_v29, %v1296_v33 }
 0x3dc   :  { %v1299_v52 = vrot.slane %v1298_v5, 1 }
 0x3de   :  { %v1300_v14 = vadd.f32 %v1299_v52, %v1298_v5 }
 0x3e0   :  { %v1307_v0 = vadd.f32 %v1306_v35, %v1300_v14 }
 0x3e2   :  { %1308 = vst [vmem:[#allocation3] sm:$0x1] %v1307_v0 }
 0x3e3   :  { %1319 = dma.vmem_to_hbm [thread:$0]  %s1315_s26, 16, %s1317_s11, [#allocation4]  }
 0x3e4   :  { %1535 = dma.done.wait [#allocation4], 16  }
 0x3e5   :  { %1536 = vsyncadd [#allocation4], 4294967280 }
 0x3e6   :  { %1324 = vsyncpa [#allocation4], 1 }

</bundles_post_ra>
